<compile_context>
chip_gen: v5e
topology: v5e:2x2
jax: 0.10.0
libtpu: 0.0.40
codegen_flags: <defaults>
</compile_context>

<pallas_src>
import functools

import jax
import jax.numpy as jnp
from jax import lax
from jax.experimental import pallas as pl
from jax.experimental.pallas import tpu as pltpu

_LANE = 128          # TPU lane width: last dim of every block
_MAX_ROWS = 4096     # sublane rows per block -> 2 MiB / input / buffer at f32
_NUM_SPLITS = 2      # leading "parallel" axis: feeds both TensorCores on v7x


def _round_up(a, b):
    return -(-a // b) * b


def _fold_to_vreg(v, tm):
    """(tm, 128) -> (8, 128) by summing whole (8,128) sub-tiles.

    Pure full-vreg VPU adds in the steady-state loop; the cross-sublane /
    cross-lane reduction is deferred to the wrapper's final combine.
    """
    return jnp.sum(v.reshape(tm // 8, 8, _LANE), axis=0)


def _accumulate(o_ref, x, t, valid, tm):
    """Add this block's partial sums into the resident output accumulator.

    o_ref[0, 0] += sum(BCE terms)     o_ref[0, 1] += sum(sigmoid(x) * t)
    o_ref[0, 2] += sum(sigmoid(x))    o_ref[0, 3] += sum(t)
    """
    if valid is not None:
        # Out-of-range VMEM contents are unspecified: sanitize before any math
        # so NaN/Inf garbage cannot poison the sums through a 0-multiply.
        x = jnp.where(valid, x, 0.0)
        t = jnp.where(valid, t, 0.0)

    # Shared-exp rewrite: 1 exp + 1 log1p + 1 reciprocal per element (EUP).
    e = jnp.exp(-jnp.abs(x))                            # exp(-|x|)
    bce = jnp.maximum(x, 0.0) - x * t + jnp.log1p(e)    # stable BCE-with-logits
    r = 1.0 / (1.0 + e)
    sig = jnp.where(x >= 0.0, r, e * r)                 # sigmoid(x)

    if valid is not None:
        vf = valid.astype(jnp.float32)
        bce = bce * vf          # sanitized tail x=0 would give log(2)
        sig = sig * vf          # sanitized tail x=0 would give 0.5
        # t and sig * t are already exactly 0 in the sanitized tail.

    o_ref[0, 0, :, :] += _fold_to_vreg(bce, tm)
    o_ref[0, 1, :, :] += _fold_to_vreg(sig * t, tm)
    o_ref[0, 2, :, :] += _fold_to_vreg(sig, tm)
    o_ref[0, 3, :, :] += _fold_to_vreg(t, tm)


def _dice_bce_kernel(x_ref, t_ref, o_ref, *, tm, n_elem, n_full_blocks):
    c = pl.program_id(0)            # parallel split (one per TensorCore on v7x)
    step = pl.program_id(1)         # reduction over this split's row-blocks
    steps = pl.num_programs(1)
    rb = c * steps + step           # global (virtual) row-block index

    @pl.when(step == 0)
    def _init():
        o_ref[...] = jnp.zeros_like(o_ref)

    # Inputs stay in their HBM dtype (bf16 / f32 / ...); upcast after load.
    x = x_ref[...].astype(jnp.float32)
    t = t_ref[...].astype(jnp.float32)

    # Fast path: block lies entirely inside the flattened tensor (no mask math).
    @pl.when(rb < n_full_blocks)
    def _full_block():
        _accumulate(o_ref, x, t, None, tm)

    # Tail / overflow path: build the validity mask only here.
    @pl.when(rb >= n_full_blocks)
    def _tail_block():
        row_ids = lax.broadcasted_iota(jnp.int32, (tm, _LANE), 0)
        lane_ids = lax.broadcasted_iota(jnp.int32, (tm, _LANE), 1)
        # int32 flat index: assumes < 2**31 elements (ample for this model).
        flat_idx = (rb * tm + row_ids) * _LANE + lane_ids
        _accumulate(o_ref, x, t, flat_idx < n_elem, tm)


def dice_bce_loss(logits, targets):
    """0.5 * BCEWithLogitsLoss(logits, targets) + 0.5 * soft-Dice loss."""
    x = logits.reshape(-1)          # reshape of a contiguous array: no HBM copy
    t = targets.reshape(-1)
    n = x.shape[0]

    rows = pl.cdiv(n, _LANE)
    if rows * _LANE != n:
        # TODO(synk): a remainder < 128 forces one small XLA pad copy; typical
        # segmentation shapes (multiples of 128) take the copy-free path.
        pad = rows * _LANE - n
        x = jnp.pad(x, (0, pad))
        t = jnp.pad(t, (0, pad))
    x2 = x.reshape(rows, _LANE)     # lane-dense view, still no extra HBM pass
    t2 = t.reshape(rows, _LANE)

    tm = min(_MAX_ROWS, _round_up(rows, 8))
    grid_m = pl.cdiv(rows, tm)                  # real row-blocks
    steps = pl.cdiv(grid_m, _NUM_SPLITS)        # row-blocks per parallel split
    n_full_blocks = n // (tm * _LANE)           # blocks with no invalid tail

    def in_map(c, i):
        # Clamp so the overflow step of the last split stays in-bounds; its
        # contribution is fully masked in-kernel.
        return (jnp.minimum(c * steps + i, grid_m - 1), 0)

    partial = pl.pallas_call(
        functools.partial(_dice_bce_kernel, tm=tm, n_elem=n,
                          n_full_blocks=n_full_blocks),
        out_shape=jax.ShapeDtypeStruct((_NUM_SPLITS, 4, 8, _LANE), jnp.float32),
        grid=(_NUM_SPLITS, steps),
        in_specs=[
            pl.BlockSpec((tm, _LANE), in_map),
            pl.BlockSpec((tm, _LANE), in_map),
        ],
        out_specs=pl.BlockSpec((1, 4, 8, _LANE), lambda c, i: (c, 0, 0, 0)),
        compiler_params=pltpu.CompilerParams(
            dimension_semantics=("parallel", "arbitrary"),
            vmem_limit_bytes=48 * 1024 * 1024,
        ),
    )(x2, t2)

    # Tiny final combine (2*4*8*128 floats) in plain XLA.
    sums = jnp.sum(partial, axis=(0, 2, 3))     # [bce_sum, inter, sig_sum, tgt_sum]
    bce_mean = sums[0] / jnp.float32(n)
    dice = 1.0 - (2.0 * sums[1] + 1.0) / (sums[2] + sums[3] + 1.0)
    return 0.5 * bce_mean + 0.5 * dice


def _dice_bce_ref(logits, targets):
    # Pure-JAX reference (mirrors the PyTorch module).
    x = logits.astype(jnp.float32).reshape(-1)
    t = targets.astype(jnp.float32).reshape(-1)
    bce = jnp.mean(jnp.maximum(x, 0.0) - x * t + jnp.log1p(jnp.exp(-jnp.abs(x))))
    s = jax.nn.sigmoid(x)
    inter = jnp.sum(s * t)
    dice = 1.0 - (2.0 * inter + 1.0) / (jnp.sum(s) + jnp.sum(t) + 1.0)
    return 0.5 * bce + 0.5 * dice


if __name__ == "__main__":
    key = jax.random.PRNGKey(0)
    k1, k2 = jax.random.split(key)

    # Small segmentation-style shapes: batch=2, classes=1, 16^3 volume.
    shape = (2, 1, 16, 16, 16)
    logits = 2.0 * jax.random.normal(k1, shape, jnp.float32)
    targets = (jax.random.uniform(k2, shape) > 0.5).astype(jnp.float32)

    loss = jax.jit(dice_bce_loss)(logits, targets)
    loss = jax.block_until_ready(loss)

    ref = jax.block_until_ready(_dice_bce_ref(logits, targets))
    assert bool(jnp.isfinite(loss)), loss
    assert abs(float(loss) - float(ref)) < 1e-4, (float(loss), float(ref))
    print("KERNEL_OK")
</pallas_src>

<mosaic_0001>
module attributes {stable_mosaic.version = 11 : i64} {
  func.func @_dice_bce_kernel(%arg0: i32, %arg1: i32, %arg2: memref<64x128xf32, #tpu.memory_space<vmem>>, %arg3: memref<64x128xf32, #tpu.memory_space<vmem>>, %arg4: memref<1x4x8x128xf32, #tpu.memory_space<vmem>>) attributes {dimension_semantics = [#tpu.dimension_semantics<parallel>, #tpu.dimension_semantics<arbitrary>], iteration_bounds = array<i64: 2, 1>, scalar_prefetch = 0 : i64, scratch_operands = 0 : i64, tpu.core_type = #tpu.core_type<tc>, window_params = [{transform_indices = @transform_0, window_bounds = array<i64: 64, 128>}, {transform_indices = @transform_1, window_bounds = array<i64: 64, 128>}, {transform_indices = @transform_2, window_bounds = array<i64: 1, 4, 8, 128>}]} {
    %c1_i32 = arith.constant 1 : i32
    %0 = arith.muli %arg0, %c1_i32 : i32
    %1 = arith.addi %0, %arg1 : i32
    %c0_i32 = arith.constant 0 : i32
    %2 = arith.cmpi eq, %arg1, %c0_i32 : i32
    %3 = arith.extui %2 : i1 to i32
    %c0_i32_0 = arith.constant 0 : i32
    %4 = arith.cmpi ne, %3, %c0_i32_0 : i32
    scf.if %4 {
      %cst = arith.constant 0.000000e+00 : f32
      %13 = vector.broadcast %cst : f32 to vector<1x4x8x128xf32>
      %c0_8 = arith.constant 0 : index
      %c0_9 = arith.constant 0 : index
      %c0_10 = arith.constant 0 : index
      %c0_11 = arith.constant 0 : index
      %14 = vector.load %arg4[%c0_8, %c0_9, %c0_10, %c0_11] : memref<1x4x8x128xf32, #tpu.memory_space<vmem>>, vector<1x4x8x128xf32>
      tpu.vector_store %arg4[%c0_8, %c0_9, %c0_10, %c0_11], %13 {strides = array<i32>} : memref<1x4x8x128xf32, #tpu.memory_space<vmem>>, vector<1x4x8x128xf32>,
    } else {
    }
    %c0 = arith.constant 0 : index
    %c0_1 = arith.constant 0 : index
    %5 = vector.load %arg2[%c0, %c0_1] : memref<64x128xf32, #tpu.memory_space<vmem>>, vector<64x128xf32>
    %c0_2 = arith.constant 0 : index
    %c0_3 = arith.constant 0 : index
    %6 = vector.load %arg3[%c0_2, %c0_3] : memref<64x128xf32, #tpu.memory_space<vmem>>, vector<64x128xf32>
    %c1_i32_4 = arith.constant 1 : i32
    %7 = arith.cmpi slt, %1, %c1_i32_4 : i32
    %8 = arith.extui %7 : i1 to i32
    %c0_i32_5 = arith.constant 0 : i32
    %9 = arith.cmpi ne, %8, %c0_i32_5 : i32
    scf.if %9 {
      %13 = math.absf %5 : vector<64x128xf32>
      %cst = arith.constant 0.000000e+00 : f32
      %14 = vector.broadcast %cst : f32 to vector<64x128xf32>
      %15 = arith.subf %14, %13 : vector<64x128xf32>
      %16 = math.exp %15 : vector<64x128xf32>
      %cst_8 = arith.constant 0.000000e+00 : f32
      %17 = vector.broadcast %cst_8 : f32 to vector<64x128xf32>
      %18 = arith.maximumf %5, %17 : vector<64x128xf32>
      %19 = arith.mulf %5, %6 : vector<64x128xf32>
      %20 = arith.subf %18, %19 : vector<64x128xf32>
      %21 = math.log1p %16 : vector<64x128xf32>
      %22 = arith.addf %20, %21 : vector<64x128xf32>
      %cst_9 = arith.constant 1.000000e+00 : f32
      %23 = vector.broadcast %cst_9 : f32 to vector<64x128xf32>
      %24 = arith.addf %23, %16 : vector<64x128xf32>
      %cst_10 = arith.constant 1.000000e+00 : f32
      %25 = vector.broadcast %cst_10 : f32 to vector<64x128xf32>
      %26 = arith.divf %25, %24 : vector<64x128xf32>
      %cst_11 = arith.constant 0.000000e+00 : f32
      %27 = vector.broadcast %cst_11 : f32 to vector<64x128xf32>
      %28 = arith.cmpf oge, %5, %27 : vector<64x128xf32>
      %29 = arith.mulf %16, %26 : vector<64x128xf32>
      %30 = arith.select %28, %26, %29 : vector<64x128xi1>, vector<64x128xf32>
      %c0_12 = arith.constant 0 : index
      %c0_13 = arith.constant 0 : index
      %c0_14 = arith.constant 0 : index
      %c0_15 = arith.constant 0 : index
      %31 = vector.load %arg4[%c0_12, %c0_13, %c0_14, %c0_15] : memref<1x4x8x128xf32, #tpu.memory_space<vmem>>, vector<1x1x8x128xf32>
      %32 = vector.shape_cast %31 : vector<1x1x8x128xf32> to vector<8x128xf32>
      %33 = vector.shape_cast %22 : vector<64x128xf32> to vector<8x8x128xf32>
      %cst_16 = arith.constant dense<0.000000e+00> : vector<8x128xf32>
      %34 = vector.multi_reduction <add>, %33, %cst_16 [0] : vector<8x8x128xf32> to vector<8x128xf32>
      %35 = arith.addf %32, %34 : vector<8x128xf32>
      %c0_17 = arith.constant 0 : index
      %c0_18 = arith.constant 0 : index
      %c0_19 = arith.constant 0 : index
      %c0_20 = arith.constant 0 : index
      %36 = vector.load %arg4[%c0_17, %c0_18, %c0_19, %c0_20] : memref<1x4x8x128xf32, #tpu.memory_space<vmem>>, vector<1x1x8x128xf32>
      %37 = vector.shape_cast %36 : vector<1x1x8x128xf32> to vector<8x128xf32>
      %38 = vector.shape_cast %35 : vector<8x128xf32> to vector<1x1x8x128xf32>
      tpu.vector_store %arg4[%c0_17, %c0_18, %c0_19, %c0_20], %38 {strides = array<i32>} : memref<1x4x8x128xf32, #tpu.memory_space<vmem>>, vector<1x1x8x128xf32>,
      %c0_21 = arith.constant 0 : index
      %c1 = arith.constant 1 : index
      %c0_22 = arith.constant 0 : index
      %c0_23 = arith.constant 0 : index
      %39 = vector.load %arg4[%c0_21, %c1, %c0_22, %c0_23] : memref<1x4x8x128xf32, #tpu.memory_space<vmem>>, vector<1x1x8x128xf32>
      %40 = vector.shape_cast %39 : vector<1x1x8x128xf32> to vector<8x128xf32>
      %41 = arith.mulf %30, %6 : vector<64x128xf32>
      %42 = vector.shape_cast %41 : vector<64x128xf32> to vector<8x8x128xf32>
      %cst_24 = arith.constant dense<0.000000e+00> : vector<8x128xf32>
      %43 = vector.multi_reduction <add>, %42, %cst_24 [0] : vector<8x8x128xf32> to vector<8x128xf32>
      %44 = arith.addf %40, %43 : vector<8x128xf32>
      %c0_25 = arith.constant 0 : index
      %c1_26 = arith.constant 1 : index
      %c0_27 = arith.constant 0 : index
      %c0_28 = arith.constant 0 : index
      %45 = vector.load %arg4[%c0_25, %c1_26, %c0_27, %c0_28] : memref<1x4x8x128xf32, #tpu.memory_space<vmem>>, vector<1x1x8x128xf32>
      %46 = vector.shape_cast %45 : vector<1x1x8x128xf32> to vector<8x128xf32>
      %47 = vector.shape_cast %44 : vector<8x128xf32> to vector<1x1x8x128xf32>
      tpu.vector_store %arg4[%c0_25, %c1_26, %c0_27, %c0_28], %47 {strides = array<i32>} : memref<1x4x8x128xf32, #tpu.memory_space<vmem>>, vector<1x1x8x128xf32>,
      %c0_29 = arith.constant 0 : index
      %c2 = arith.constant 2 : index
      %c0_30 = arith.constant 0 : index
      %c0_31 = arith.constant 0 : index
      %48 = vector.load %arg4[%c0_29, %c2, %c0_30, %c0_31] : memref<1x4x8x128xf32, #tpu.memory_space<vmem>>, vector<1x1x8x128xf32>
      %49 = vector.shape_cast %48 : vector<1x1x8x128xf32> to vector<8x128xf32>
      %50 = vector.shape_cast %30 : vector<64x128xf32> to vector<8x8x128xf32>
      %cst_32 = arith.constant dense<0.000000e+00> : vector<8x128xf32>
      %51 = vector.multi_reduction <add>, %50, %cst_32 [0] : vector<8x8x128xf32> to vector<8x128xf32>
      %52 = arith.addf %49, %51 : vector<8x128xf32>
      %c0_33 = arith.constant 0 : index
      %c2_34 = arith.constant 2 : index
      %c0_35 = arith.constant 0 : index
      %c0_36 = arith.constant 0 : index
      %53 = vector.load %arg4[%c0_33, %c2_34, %c0_35, %c0_36] : memref<1x4x8x128xf32, #tpu.memory_space<vmem>>, vector<1x1x8x128xf32>
      %54 = vector.shape_cast %53 : vector<1x1x8x128xf32> to vector<8x128xf32>
      %55 = vector.shape_cast %52 : vector<8x128xf32> to vector<1x1x8x128xf32>
      tpu.vector_store %arg4[%c0_33, %c2_34, %c0_35, %c0_36], %55 {strides = array<i32>} : memref<1x4x8x128xf32, #tpu.memory_space<vmem>>, vector<1x1x8x128xf32>,
      %c0_37 = arith.constant 0 : index
      %c3 = arith.constant 3 : index
      %c0_38 = arith.constant 0 : index
      %c0_39 = arith.constant 0 : index
      %56 = vector.load %arg4[%c0_37, %c3, %c0_38, %c0_39] : memref<1x4x8x128xf32, #tpu.memory_space<vmem>>, vector<1x1x8x128xf32>
      %57 = vector.shape_cast %56 : vector<1x1x8x128xf32> to vector<8x128xf32>
      %58 = vector.shape_cast %6 : vector<64x128xf32> to vector<8x8x128xf32>
      %cst_40 = arith.constant dense<0.000000e+00> : vector<8x128xf32>
      %59 = vector.multi_reduction <add>, %58, %cst_40 [0] : vector<8x8x128xf32> to vector<8x128xf32>
      %60 = arith.addf %57, %59 : vector<8x128xf32>
      %c0_41 = arith.constant 0 : index
      %c3_42 = arith.constant 3 : index
      %c0_43 = arith.constant 0 : index
      %c0_44 = arith.constant 0 : index
      %61 = vector.load %arg4[%c0_41, %c3_42, %c0_43, %c0_44] : memref<1x4x8x128xf32, #tpu.memory_space<vmem>>, vector<1x1x8x128xf32>
      %62 = vector.shape_cast %61 : vector<1x1x8x128xf32> to vector<8x128xf32>
      %63 = vector.shape_cast %60 : vector<8x128xf32> to vector<1x1x8x128xf32>
      tpu.vector_store %arg4[%c0_41, %c3_42, %c0_43, %c0_44], %63 {strides = array<i32>} : memref<1x4x8x128xf32, #tpu.memory_space<vmem>>, vector<1x1x8x128xf32>,
    } else {
    }
    %c1_i32_6 = arith.constant 1 : i32
    %10 = arith.cmpi sge, %1, %c1_i32_6 : i32
    %11 = arith.extui %10 : i1 to i32
    %c0_i32_7 = arith.constant 0 : i32
    %12 = arith.cmpi ne, %11, %c0_i32_7 : i32
    scf.if %12 {
      %13 = tpu.iota {dimensions = array<i32: 0>} : vector<64x128xi32>
      %14 = tpu.iota {dimensions = array<i32: 1>} : vector<64x128xi32>
      %c64_i32 = arith.constant 64 : i32
      %15 = arith.muli %1, %c64_i32 : i32
      %16 = vector.broadcast %15 : i32 to vector<64x128xi32>
      %17 = arith.addi %16, %13 : vector<64x128xi32>
      %c128_i32 = arith.constant 128 : i32
      %18 = vector.broadcast %c128_i32 : i32 to vector<64x128xi32>
      %19 = arith.muli %17, %18 : vector<64x128xi32>
      %20 = arith.addi %19, %14 : vector<64x128xi32>
      %c8192_i32 = arith.constant 8192 : i32
      %21 = vector.broadcast %c8192_i32 : i32 to vector<64x128xi32>
      %22 = arith.cmpi slt, %20, %21 : vector<64x128xi32>
      %cst = arith.constant 0.000000e+00 : f32
      %23 = vector.broadcast %cst : f32 to vector<64x128xf32>
      %24 = arith.select %22, %5, %23 : vector<64x128xi1>, vector<64x128xf32>
      %cst_8 = arith.constant 0.000000e+00 : f32
      %25 = vector.broadcast %cst_8 : f32 to vector<64x128xf32>
      %26 = arith.select %22, %6, %25 : vector<64x128xi1>, vector<64x128xf32>
      %27 = math.absf %24 : vector<64x128xf32>
      %cst_9 = arith.constant 0.000000e+00 : f32
      %28 = vector.broadcast %cst_9 : f32 to vector<64x128xf32>
      %29 = arith.subf %28, %27 : vector<64x128xf32>
      %30 = math.exp %29 : vector<64x128xf32>
      %cst_10 = arith.constant 0.000000e+00 : f32
      %31 = vector.broadcast %cst_10 : f32 to vector<64x128xf32>
      %32 = arith.maximumf %24, %31 : vector<64x128xf32>
      %33 = arith.mulf %24, %26 : vector<64x128xf32>
      %34 = arith.subf %32, %33 : vector<64x128xf32>
      %35 = math.log1p %30 : vector<64x128xf32>
      %36 = arith.addf %34, %35 : vector<64x128xf32>
      %cst_11 = arith.constant 1.000000e+00 : f32
      %37 = vector.broadcast %cst_11 : f32 to vector<64x128xf32>
      %38 = arith.addf %37, %30 : vector<64x128xf32>
      %cst_12 = arith.constant 1.000000e+00 : f32
      %39 = vector.broadcast %cst_12 : f32 to vector<64x128xf32>
      %40 = arith.divf %39, %38 : vector<64x128xf32>
      %cst_13 = arith.constant 0.000000e+00 : f32
      %41 = vector.broadcast %cst_13 : f32 to vector<64x128xf32>
      %42 = arith.cmpf oge, %24, %41 : vector<64x128xf32>
      %43 = arith.mulf %30, %40 : vector<64x128xf32>
      %44 = arith.select %42, %40, %43 : vector<64x128xi1>, vector<64x128xf32>
      %45 = arith.extui %22 : vector<64x128xi1> to vector<64x128xi32>
      %46 = arith.sitofp %45 : vector<64x128xi32> to vector<64x128xf32>
      %47 = arith.mulf %36, %46 : vector<64x128xf32>
      %48 = arith.mulf %44, %46 : vector<64x128xf32>
      %c0_14 = arith.constant 0 : index
      %c0_15 = arith.constant 0 : index
      %c0_16 = arith.constant 0 : index
      %c0_17 = arith.constant 0 : index
      %49 = vector.load %arg4[%c0_14, %c0_15, %c0_16, %c0_17] : memref<1x4x8x128xf32, #tpu.memory_space<vmem>>, vector<1x1x8x128xf32>
      %50 = vector.shape_cast %49 : vector<1x1x8x128xf32> to vector<8x128xf32>
      %51 = vector.shape_cast %47 : vector<64x128xf32> to vector<8x8x128xf32>
      %cst_18 = arith.constant dense<0.000000e+00> : vector<8x128xf32>
      %52 = vector.multi_reduction <add>, %51, %cst_18 [0] : vector<8x8x128xf32> to vector<8x128xf32>
      %53 = arith.addf %50, %52 : vector<8x128xf32>
      %c0_19 = arith.constant 0 : index
      %c0_20 = arith.constant 0 : index
      %c0_21 = arith.constant 0 : index
      %c0_22 = arith.constant 0 : index
      %54 = vector.load %arg4[%c0_19, %c0_20, %c0_21, %c0_22] : memref<1x4x8x128xf32, #tpu.memory_space<vmem>>, vector<1x1x8x128xf32>
      %55 = vector.shape_cast %54 : vector<1x1x8x128xf32> to vector<8x128xf32>
      %56 = vector.shape_cast %53 : vector<8x128xf32> to vector<1x1x8x128xf32>
      tpu.vector_store %arg4[%c0_19, %c0_20, %c0_21, %c0_22], %56 {strides = array<i32>} : memref<1x4x8x128xf32, #tpu.memory_space<vmem>>, vector<1x1x8x128xf32>,
      %c0_23 = arith.constant 0 : index
      %c1 = arith.constant 1 : index
      %c0_24 = arith.constant 0 : index
      %c0_25 = arith.constant 0 : index
      %57 = vector.load %arg4[%c0_23, %c1, %c0_24, %c0_25] : memref<1x4x8x128xf32, #tpu.memory_space<vmem>>, vector<1x1x8x128xf32>
      %58 = vector.shape_cast %57 : vector<1x1x8x128xf32> to vector<8x128xf32>
      %59 = arith.mulf %48, %26 : vector<64x128xf32>
      %60 = vector.shape_cast %59 : vector<64x128xf32> to vector<8x8x128xf32>
      %cst_26 = arith.constant dense<0.000000e+00> : vector<8x128xf32>
      %61 = vector.multi_reduction <add>, %60, %cst_26 [0] : vector<8x8x128xf32> to vector<8x128xf32>
      %62 = arith.addf %58, %61 : vector<8x128xf32>
      %c0_27 = arith.constant 0 : index
      %c1_28 = arith.constant 1 : index
      %c0_29 = arith.constant 0 : index
      %c0_30 = arith.constant 0 : index
      %63 = vector.load %arg4[%c0_27, %c1_28, %c0_29, %c0_30] : memref<1x4x8x128xf32, #tpu.memory_space<vmem>>, vector<1x1x8x128xf32>
      %64 = vector.shape_cast %63 : vector<1x1x8x128xf32> to vector<8x128xf32>
      %65 = vector.shape_cast %62 : vector<8x128xf32> to vector<1x1x8x128xf32>
      tpu.vector_store %arg4[%c0_27, %c1_28, %c0_29, %c0_30], %65 {strides = array<i32>} : memref<1x4x8x128xf32, #tpu.memory_space<vmem>>, vector<1x1x8x128xf32>,
      %c0_31 = arith.constant 0 : index
      %c2 = arith.constant 2 : index
      %c0_32 = arith.constant 0 : index
      %c0_33 = arith.constant 0 : index
      %66 = vector.load %arg4[%c0_31, %c2, %c0_32, %c0_33] : memref<1x4x8x128xf32, #tpu.memory_space<vmem>>, vector<1x1x8x128xf32>
      %67 = vector.shape_cast %66 : vector<1x1x8x128xf32> to vector<8x128xf32>
      %68 = vector.shape_cast %48 : vector<64x128xf32> to vector<8x8x128xf32>
      %cst_34 = arith.constant dense<0.000000e+00> : vector<8x128xf32>
      %69 = vector.multi_reduction <add>, %68, %cst_34 [0] : vector<8x8x128xf32> to vector<8x128xf32>
      %70 = arith.addf %67, %69 : vector<8x128xf32>
      %c0_35 = arith.constant 0 : index
      %c2_36 = arith.constant 2 : index
      %c0_37 = arith.constant 0 : index
      %c0_38 = arith.constant 0 : index
      %71 = vector.load %arg4[%c0_35, %c2_36, %c0_37, %c0_38] : memref<1x4x8x128xf32, #tpu.memory_space<vmem>>, vector<1x1x8x128xf32>
      %72 = vector.shape_cast %71 : vector<1x1x8x128xf32> to vector<8x128xf32>
      %73 = vector.shape_cast %70 : vector<8x128xf32> to vector<1x1x8x128xf32>
      tpu.vector_store %arg4[%c0_35, %c2_36, %c0_37, %c0_38], %73 {strides = array<i32>} : memref<1x4x8x128xf32, #tpu.memory_space<vmem>>, vector<1x1x8x128xf32>,
      %c0_39 = arith.constant 0 : index
      %c3 = arith.constant 3 : index
      %c0_40 = arith.constant 0 : index
      %c0_41 = arith.constant 0 : index
      %74 = vector.load %arg4[%c0_39, %c3, %c0_40, %c0_41] : memref<1x4x8x128xf32, #tpu.memory_space<vmem>>, vector<1x1x8x128xf32>
      %75 = vector.shape_cast %74 : vector<1x1x8x128xf32> to vector<8x128xf32>
      %76 = vector.shape_cast %26 : vector<64x128xf32> to vector<8x8x128xf32>
      %cst_42 = arith.constant dense<0.000000e+00> : vector<8x128xf32>
      %77 = vector.multi_reduction <add>, %76, %cst_42 [0] : vector<8x8x128xf32> to vector<8x128xf32>
      %78 = arith.addf %75, %77 : vector<8x128xf32>
      %c0_43 = arith.constant 0 : index
      %c3_44 = arith.constant 3 : index
      %c0_45 = arith.constant 0 : index
      %c0_46 = arith.constant 0 : index
      %79 = vector.load %arg4[%c0_43, %c3_44, %c0_45, %c0_46] : memref<1x4x8x128xf32, #tpu.memory_space<vmem>>, vector<1x1x8x128xf32>
      %80 = vector.shape_cast %79 : vector<1x1x8x128xf32> to vector<8x128xf32>
      %81 = vector.shape_cast %78 : vector<8x128xf32> to vector<1x1x8x128xf32>
      tpu.vector_store %arg4[%c0_43, %c3_44, %c0_45, %c0_46], %81 {strides = array<i32>} : memref<1x4x8x128xf32, #tpu.memory_space<vmem>>, vector<1x1x8x128xf32>,
    } else {
    }
    return
  }
  func.func @transform_0(%arg0: i32, %arg1: i32) -> (i32, i32) {
    %c1_i32 = arith.constant 1 : i32
    %0 = arith.muli %arg0, %c1_i32 : i32
    %1 = arith.addi %0, %arg1 : i32
    %c0_i32 = arith.constant 0 : i32
    %2 = arith.minsi %1, %c0_i32 : i32
    %c0_i32_0 = arith.constant 0 : i32
    %c0_i32_1 = arith.constant 0 : i32
    return %2, %c0_i32_0 : i32, i32
  }
  func.func @transform_1(%arg0: i32, %arg1: i32) -> (i32, i32) {
    %c1_i32 = arith.constant 1 : i32
    %0 = arith.muli %arg0, %c1_i32 : i32
    %1 = arith.addi %0, %arg1 : i32
    %c0_i32 = arith.constant 0 : i32
    %2 = arith.minsi %1, %c0_i32 : i32
    %c0_i32_0 = arith.constant 0 : i32
    %c0_i32_1 = arith.constant 0 : i32
    return %2, %c0_i32_0 : i32, i32
  }
  func.func @transform_2(%arg0: i32, %arg1: i32) -> (i32, i32, i32, i32) {
    %c0_i32 = arith.constant 0 : i32
    %c0_i32_0 = arith.constant 0 : i32
    %c0_i32_1 = arith.constant 0 : i32
    %c0_i32_2 = arith.constant 0 : i32
    return %arg0, %c0_i32, %c0_i32_0, %c0_i32_1 : i32, i32, i32, i32
  }
}

</mosaic_0001>

<bundles_post_ra>
// kernel: dice_bce_loss.1
= control target key start
LH: loop header
LB: loop body
LE: loop exit
PB: predicated region body
PF: predicated region fallthrough
CT: control target
= control target key end

     0   :  { %s1301_s9 = smov 0   ;;  %s1303_s10 = smov 0   ;;  %s2381_s0 = inlined_call_operand.vmem [shape: f32[64,128], index: 0, kind: input, shape index: {}]   ;;  %s2382_s1 = inlined_call_operand.vmem [shape: f32[64,128], index: 1, kind: input, shape index: {}]   ;;  %s2383_s2 = inlined_call_operand.vmem [shape: f32[2,4,8,128], index: 2, kind: output, shape index: {}]  }
   0x1   :  { %s1305_s11 = smov 0  }
   0x2 LB: > { %s24_s12 = sadd.s32 1, %s1278_s10  ;;  %p1105_p0 = scmp.ge.s32.totalorder %s1282_s11, 1  ;;  %s1282_s11 = sphi %s1305_s11, %s12_s11   ;;  %s1278_s10 = sphi %s1303_s10, %s2577_s10   ;;  %s1274_s9 = sphi %s1301_s9, %s2576_s9  }
   0x3   : > { %p26_p1 = scmp.ge.s32.totalorder %s24_s12, 2  ;;  %p160_p2 = scmp.lt.s32.totalorder %s1282_s11, 3 }
   0x5   : > { %s2579_s12 = smov (%p26_p1, %s24_s12), 0  ;;  %p161_p3 = pnand %p1105_p0, %p160_p2 }
   0x7   : > { %164 = sbr.rel (%p161_p3) target bundleno = 230 (0xe6), region = 28 }
   0xc   : > { %p194_p4 = scmp.lt.s32.totalorder %s1274_s9, 0  ;;  %p217_p5 = scmp.lt.s32.totalorder %s1274_s9, 1  ;;  %v1284_v0 = vmov 0.0  }
   0xd   : > { %p1112_p7 = scmp.ge.s32.totalorder %s1274_s9, 1 }
   0xe   : > { %s195_s13 = scalar_select %p194_p4, %s1274_s9, 0 }
   0xf   : > { %s218_s14 = scalar_select %p217_p5, %s1274_s9, 1 }
  0x10   : > { %s1106_s15 = sshll.u32 %s195_s13, 3 }
  0x11   : > { %p197_p6 = scmp.lt.s32.totalorder %s1106_s15, 7  ;;  %s1137_s16 = sshll.u32 %s218_s14, 5 }
  0x12   : > { %s1330_s19 = scalar_lea.vmem %s2383_s2, %s1137_s16 }
  0x13   : > { %s2581_s15 = smov (!%p197_p6, %s1106_s15), 7  ;;  %227 = vst [vmem:[%s1330_s19] sm:$0xff] %v1284_v0 }
  0x14   : > { %228 = vst [vmem:[%s1330_s19 + $0x8] sm:$0xff] %v1284_v0  ;;  %s1107_s20 = sshll.u32 %s2581_s15, 3 }
  0x15   : > { %229 = vst [vmem:[%s1330_s19 + $0x10] sm:$0xff] %v1284_v0  ;;  %s200_s23 = scalar_lea.vmem %s2381_s0, %s1107_s20  ;;  %s212_s26 = scalar_lea.vmem %s2382_s1, %s1107_s20 }
  0x16   : > { %230 = vst [vmem:[%s1330_s19 + $0x18] sm:$0xff] %v1284_v0  ;;  %v1342_v1 = vld [vmem:[%s200_s23] sm:$0xff]  ;;  %v1344_v2 = vld [vmem:[%s200_s23 + $0x8] sm:$0xff]  ;;  %v1346_v3 = vld [vmem:[%s200_s23 + $0x10] sm:$0xff] }
  0x17   : > { %v1348_v4 = vld [vmem:[%s200_s23 + $0x18] sm:$0xff]  ;;  %v1350_v5 = vld [vmem:[%s200_s23 + $0x20] sm:$0xff]  ;;  %v1352_v6 = vld [vmem:[%s200_s23 + $0x28] sm:$0xff] }
  0x18   : > { %v1354_v7 = vld [vmem:[%s200_s23 + $0x30] sm:$0xff]  ;;  %v1356_v8 = vld [vmem:[%s200_s23 + $0x38] sm:$0xff]  ;;  %v1358_v9 = vld [vmem:[%s212_s26] sm:$0xff] }
  0x19   : > { %2423 = vst [vmem:[#allocation2_spill] sm:$0xff] %v1356_v8  ;;  %v1360_v10 = vld [vmem:[%s212_s26 + $0x8] sm:$0xff]  ;;  %v1362_v11 = vld [vmem:[%s212_s26 + $0x10] sm:$0xff]  ;;  %v1364_v12 = vld [vmem:[%s212_s26 + $0x18] sm:$0xff] }
  0x1a   : > { %v1366_v13 = vld [vmem:[%s212_s26 + $0x20] sm:$0xff]  ;;  %v1368_v14 = vld [vmem:[%s212_s26 + $0x28] sm:$0xff]  ;;  %v1370_v15 = vld [vmem:[%s212_s26 + $0x30] sm:$0xff]  ;;  %250 = sbr.rel (%p1112_p7) target bundleno = 115 (0x73), region = 36 }
  0x1b   : > { %2424 = vst [vmem:[#allocation3_spill] sm:$0xff] %v1366_v13  ;;  %v1372_v16 = vld [vmem:[%s212_s26 + $0x38] sm:$0xff] }
  0x1c   : > { %2425 = vst [vmem:[#allocation4_spill] sm:$0xff] %v1368_v14 }
  0x1d   : > { %2426 = vst [vmem:[#allocation5_spill] sm:$0xff] %v1370_v15 }
  0x1e   : > { %2427 = vst [vmem:[#allocation6_spill] sm:$0xff] %v1372_v16 }
  0x1f   : > { %v251_v17 = vand.u32 2147483647, %v1342_v1  ;;  %v252_v18 = vand.u32 2147483647, %v1344_v2  ;;  %v253_v19 = vand.u32 2147483647, %v1346_v3  ;;  %v291_v38 = vmul.f32 %v1358_v9, %v1342_v1 }
  0x20   : > { %v254_v20 = vand.u32 2147483647, %v1348_v4  ;;  %v255_v21 = vand.u32 2147483647, %v1350_v5  ;;  %v256_v22 = vand.u32 2147483647, %v1352_v6  ;;  %v292_v40 = vmul.f32 %v1360_v10, %v1344_v2 }
  0x21   : > { %v257_v23 = vand.u32 2147483647, %v1354_v7  ;;  %v258_v24 = vand.u32 2147483647, %v1356_v8  ;;  %v259_v25 = vsub.f32 0.0, %v251_v17  ;;  %v260_v26 = vsub.f32 0.0, %v252_v18 }
  0x22   : > { %v261_v27 = vsub.f32 0.0, %v253_v19  ;;  %v262_v28 = vsub.f32 0.0, %v254_v20  ;;  %v263_v29 = vsub.f32 0.0, %v255_v21  ;;  %v264_v30 = vsub.f32 0.0, %v256_v22 }
  0x23   : > { %v267_v31 = vmul.f32 1.442695, %v259_v25  ;;  %v269_v32 = vmul.f32 1.442695, %v260_v26  ;;  %v265_v33 = vsub.f32 0.0, %v257_v23  ;;  %v266_v36 = vsub.f32 0.0, %v258_v24 }
  0x24   : > { %v271_v34 = vmul.f32 1.442695, %v261_v27  ;;  %v273_v35 = vmul.f32 1.442695, %v262_v28  ;;  %v275_v37 = vmul.f32 1.442695, %v263_v29  ;;  %v293_v41 = vmul.f32 %v1362_v11, %v1346_v3 }
  0x25   : > { %1164 = vpow2.f32 %v267_v31  ;;  %v277_v39 = vmul.f32 1.442695, %v264_v30  ;;  %v279_v42 = vmul.f32 1.442695, %v265_v33  ;;  %v283_v43 = vmax.f32 %v1342_v1, 0.0 }
  0x26   : > { %1166 = vpow2.f32 %v269_v32  ;;  %v284_v44 = vmax.f32 %v1344_v2, 0.0  ;;  %v281_v45 = vmul.f32 1.442695, %v266_v36  ;;  %v285_v46 = vmax.f32 %v1346_v3, 0.0 }
  0x27   : > { %1168 = vpow2.f32 %v271_v34  ;;  %v286_v47 = vmax.f32 %v1348_v4, 0.0  ;;  %v287_v48 = vmax.f32 %v1350_v5, 0.0  ;;  %v288_v49 = vmax.f32 %v1352_v6, 0.0 }
  0x28   : > { %1170 = vpow2.f32 %v273_v35  ;;  %v289_v50 = vmax.f32 %v1354_v7, 0.0  ;;  %v290_v51 = vmax.f32 %v1356_v8, 0.0  ;;  %v294_v53 = vmul.f32 %v1364_v12, %v1348_v4 }
  0x29   : > { %1172 = vpow2.f32 %v275_v37  ;;  %v295_v54 = vmul.f32 %v1366_v13, %v1350_v5  ;;  %v296_v55 = vmul.f32 %v1368_v14, %v1352_v6  ;;  %v297_v57 = vmul.f32 %v1370_v15, %v1354_v7 }
  0x2a   : > { %1174 = vpow2.f32 %v277_v39  ;;  %v298_v58 = vmul.f32 %v1372_v16, %v1356_v8  ;;  %v1411_v59 = vsub.f32 %v283_v43, %v291_v38  ;;  %v1413_v60 = vsub.f32 %v284_v44, %v292_v40 }
  0x2b   : > { %v1397_v52 = vpop.eup %1164  ;;  %1176 = vpow2.f32 %v279_v42  ;;  %v1417_v62 = vsub.f32 %v285_v46, %v293_v41  ;;  %v1430_v21 = vsub.f32 %v286_v47, %v294_v53  ;;  %v1432_v22 = vsub.f32 %v287_v48, %v295_v54 }
  0x2c   : > { %v1405_v56 = vpop.eup %1166  ;;  %v1420_v63 = vadd.f32 1.0, %v1397_v52  ;;  %v310_v0 = vmul.f32 -0.5, %v1397_v52  ;;  %1178 = vpow2.f32 %v281_v45  ;;  %v1440_v25 = vsub.f32 %v288_v49, %v296_v55 }
  0x2d   : > { %v1415_v61 = vpop.eup %1168  ;;  %v1426_v18 = vadd.f32 1.0, %v1405_v56  ;;  %v319_v19 = vmul.f32 -0.5, %v1405_v56  ;;  %v1442_v26 = vsub.f32 %v289_v50, %v297_v57  ;;  %v313_v27 = vand.u32 2147483647, %v1397_v52 }
  0x2e   : > { %v1423_v17 = vpop.eup %1170  ;;  %v328_v20 = vmul.f32 -0.5, %v1415_v61  ;;  %1180 = vlog2.f32 %v1420_v63  ;;  %v1436_v23 = vadd.f32 1.0, %v1415_v61  ;;  %v311_v29 = vadd.f32 1.0, %v310_v0 }
  0x2f   : > { %v1438_v24 = vpop.eup %1172  ;;  %1182 = vlog2.f32 %v1426_v18  ;;  %v322_v30 = vand.u32 2147483647, %v1405_v56  ;;  %v1451_v31 = vadd.f32 1.0, %v1423_v17  ;;  %v320_v32 = vadd.f32 1.0, %v319_v19 }
  0x30   : > { %v1446_v28 = vpop.eup %1174  ;;  %1184 = vlog2.f32 %v1436_v23  ;;  %v329_v33 = vadd.f32 1.0, %v328_v20  ;;  %v331_v34 = vand.u32 2147483647, %v1415_v61  ;;  %v337_v35 = vmul.f32 -0.5, %v1423_v17 }
  0x31   : > { %v1455_v36 = vpop.eup %1176  ;;  %1186 = vlog2.f32 %v1451_v31  ;;  %v340_v37 = vand.u32 2147483647, %v1423_v17  ;;  %v1460_v38 = vadd.f32 1.0, %v1438_v24  ;;  %v346_v39 = vmul.f32 -0.5, %v1438_v24 }
  0x32   : > { %v1463_v40 = vpop.eup %1178  ;;  %v1465_v41 = vsub.f32 %v290_v51, %v298_v58  ;;  %vm1467_vm0 = vcmp.lt.f32.partialorder %v313_v27, 0.0004427343  ;;  %v1472_v43 = vadd.f32 1.0, %v1446_v28  ;;  %v355_v44 = vmul.f32 -0.5, %v1446_v28 }
  0x33   : > { %v312_v46 = vmul.f32 %v1397_v52, %v311_v29  ;;  %vm1476_vm1 = vcmp.lt.f32.partialorder %v322_v30, 0.0004427343  ;;  %v338_v48 = vadd.f32 1.0, %v337_v35  ;;  %1188 = vlog2.f32 %v1460_v38 }
  0x34   : > { %2428 = vst [vmem:[#allocation7_spill] sm:$0xff] %v1465_v41  ;;  %v1181_v45 = vpop.eup %1180  ;;  %v321_v50 = vmul.f32 %v1405_v56, %v320_v32  ;;  %v330_v51 = vmul.f32 %v1415_v61, %v329_v33  ;;  %vm1483_vm2 = vcmp.lt.f32.partialorder %v331_v34, 0.0004427343  ;;  %1190 = vlog2.f32 %v1472_v43 }
  0x35   : > { %v1183_v49 = vpop.eup %1182  ;;  %vm1488_vm3 = vcmp.lt.f32.partialorder %v340_v37, 0.0004427343  ;;  %v347_v57 = vadd.f32 1.0, %v346_v39  ;;  %v349_v58 = vand.u32 2147483647, %v1438_v24  ;;  %v1494_v0 = vadd.f32 1.0, %v1455_v36 }
  0x36   : > { %v1185_v54 = vpop.eup %1184  ;;  %v309_v19 = vmul.f32 0.6931472, %v1181_v45  ;;  %v356_v20 = vadd.f32 1.0, %v355_v44  ;;  %v358_v27 = vand.u32 2147483647, %v1446_v28  ;;  %v364_v29 = vmul.f32 -0.5, %v1455_v36 }
  0x37   : > { %v1187_v30 = vpop.eup %1186  ;;  %v318_v32 = vmul.f32 0.6931472, %v1183_v49  ;;  %v339_v33 = vmul.f32 %v1423_v17, %v338_v48  ;;  %1192 = vlog2.f32 %v1494_v0  ;;  %v1501_v34 = vadd.f32 1.0, %v1463_v40 }
  0x38   : > { %v327_v35 = vmul.f32 0.6931472, %v1185_v54  ;;  %v365_v37 = vadd.f32 1.0, %v364_v29  ;;  %v367_v39 = vand.u32 2147483647, %v1455_v36  ;;  %v373_v45 = vmul.f32 -0.5, %v1463_v40 }
  0x39   : > { %v1189_v44 = vpop.eup %1188  ;;  %v336_v16 = vmul.f32 0.6931472, %v1187_v30  ;;  %v348_v15 = vmul.f32 %v1438_v24, %v347_v57  ;;  %1194 = vlog2.f32 %v1501_v34  ;;  %v376_v49 = vand.u32 2147483647, %v1463_v40 }
  0x3a   : > { %v1191_v48 = vpop.eup %1190  ;;  %v315_v41 = vsel %vm1467_vm0, %v312_v46, %v309_v19  ;;  %v345_v14 = vmul.f32 0.6931472, %v1189_v44  ;;  %vm1510_vm4 = vcmp.lt.f32.partialorder %v349_v58, 0.0004427343  ;;  %v357_v29 = vmul.f32 %v1446_v28, %v356_v20  ;;  %v539_v20 = vld [vmem:[%s1330_s19] sm:$0xff] }
  0x3b   : > { %v324_v30 = vsel %vm1476_vm1, %v321_v50, %v318_v32  ;;  %v354_v13 = vmul.f32 0.6931472, %v1191_v48  ;;  %vm1517_vm5 = vcmp.lt.f32.partialorder %v358_v27, 0.0004427343  ;;  %v374_v8 = vadd.f32 1.0, %v373_v45 }
  0x3c   : > { %v333_v42 = vsel %vm1483_vm2, %v330_v51, %v327_v35  ;;  %v366_v46 = vmul.f32 %v1455_v36, %v365_v37  ;;  %vm1524_vm6 = vcmp.lt.f32.partialorder %v367_v39, 0.0004427343  ;;  %1196 = vrcp.f32 %v1420_v63 }
  0x3d   : > { %v1193_v19 = vpop.eup %1192  ;;  %v342_v47 = vsel %vm1488_vm3, %v339_v33, %v336_v16  ;;  %v351_v50 = vsel %vm1510_vm4, %v348_v15, %v345_v14  ;;  %vm1533_vm7 = vcmp.lt.f32.partialorder %v376_v49, 0.0004427343  ;;  %v1538_v51 = vadd.f32 %v315_v41, %v1411_v59 }
  0x3e   : > { %v360_v53 = vsel %vm1517_vm5, %v357_v29, %v354_v13  ;;  %v363_v27 = vmul.f32 0.6931472, %v1193_v19  ;;  %v404_v32 = vand.u32 2147483647, %v1420_v63  ;;  %1198 = vrcp.f32 %v1426_v18 }
  0x3f   : > { %v1195_v55 = vpop.eup %1194  ;;  %v1545_v16 = vmul.f32 %v1463_v40, %v374_v8  ;;  %v1548_v14 = vadd.f32 %v324_v30, %v1413_v60  ;;  %v1551_v15 = vadd.f32 %v333_v42, %v1417_v62  ;;  %v406_v59 = vand.u32 2147483648, %v1420_v63 }
  0x40   : > { %v369_v13 = vsel %vm1524_vm6, %v366_v46, %v363_v27  ;;  %v1557_v41 = vadd.f32 %v342_v47, %v1430_v21  ;;  %v421_v33 = vand.u32 2147483648, %v1426_v18  ;;  %1200 = vrcp.f32 %v1436_v23 }
  0x41   : > { %v1562_v8 = vadd.f32 %v351_v50, %v1432_v22  ;;  %v1565_v60 = vadd.f32 %v360_v53, %v1440_v25  ;;  %vm400_vm8 = vweird.f32 %v1420_v63  ;;  %v419_v62 = vand.u32 2147483647, %v1426_v18  ;;  %v2479_v53 = vld [vmem:[#allocation2_spill] sm:$0xff] }
  0x42   : > { %v1197_v35 = vpop.eup %1196  ;;  %v1569_v37 = vmul.f32 0.6931472, %v1195_v55  ;;  %vm1571_vm9 = vcmp.eq.f32.partialorder %v404_v32, 8.507059e+37  ;;  %vm415_vm10 = vweird.f32 %v1426_v18  ;;  %v436_v39 = vand.u32 2147483648, %v1436_v23 }
  0x43   : > { %2445 = vst [vmem:[#allocation8_spill] sm:$0xff] %v1565_v60  ;;  %1202 = vrcp.f32 %v1451_v31  ;;  %v1579_v22 = vadd.f32 %v369_v13, %v1442_v26  ;;  %v396_v25 = vmul.f32 %v1197_v35, %v1420_v63  ;;  %v407_v45 = vor.u32 1.1754944e-38, %v406_v59 }
  0x44   : > { %v434_v44 = vand.u32 2147483647, %v1436_v23  ;;  %v1199_v49 = vpop.eup %1198  ;;  %v422_v48 = vor.u32 1.1754944e-38, %v421_v33  ;;  %vm430_vm11 = vweird.f32 %v1436_v23  ;;  %v449_v54 = vand.u32 2147483647, %v1451_v31 }
  0x45   : > { %2448 = vst [vmem:[#allocation9_spill] sm:$0xff] %v1579_v22  ;;  %v451_v29 = vand.u32 2147483648, %v1451_v31  ;;  %v397_v30 = vsub.f32 1.0, %v396_v25  ;;  %vm401_vm12 = vweird.f32 %v1197_v35  ;;  %v411_v57 = vmul.f32 %v1199_v49, %v1426_v18 }
  0x46   : > { %vm1587_vm13 = vcmp.eq.f32.partialorder %v419_v62, 8.507059e+37  ;;  %1204 = vrcp.f32 %v1460_v38  ;;  %v1201_v42 = vpop.eup %1200  ;;  %vm416_vm14 = vweird.f32 %v1199_v49  ;;  %v437_v58 = vor.u32 1.1754944e-38, %v436_v39  ;;  %vm1605_vm1 = vmor %vm400_vm8, %vm401_vm12 }
  0x47   : > { %vm445_vm15 = vweird.f32 %v1451_v31  ;;  %v398_v19 = vmul.f32 %v1197_v35, %v397_v30  ;;  %v412_v47 = vsub.f32 1.0, %v411_v57  ;;  %v426_v50 = vmul.f32 %v1201_v42, %v1436_v23  ;;  %vm1620_vm4 = vmor %vm415_vm10, %vm416_vm14 }
  0x48   : > { %vm1598_vm0 = vcmp.eq.f32.partialorder %v434_v44, 8.507059e+37  ;;  %v452_v27 = vor.u32 1.1754944e-38, %v451_v29  ;;  %vm431_vm2 = vweird.f32 %v1201_v42  ;;  %vm1609_vm3 = vcmp.eq.f32.partialorder %v449_v54, 8.507059e+37 }
  0x49   : > { %v1203_v32 = vpop.eup %1202  ;;  %v464_v13 = vand.u32 2147483647, %v1460_v38  ;;  %v466_v33 = vand.u32 2147483648, %v1460_v38  ;;  %1206 = vrcp.f32 %v1472_v43  ;;  %v399_v62 = vadd.f32 %v1197_v35, %v398_v19  ;;  %vm1632_vm8 = vmor %vm430_vm11, %vm431_vm2 }
  0x4a   : > { %v413_v39 = vmul.f32 %v1199_v49, %v412_v47  ;;  %v427_v25 = vsub.f32 1.0, %v426_v50  ;;  %v441_v63 = vmul.f32 %v1203_v32, %v1451_v31  ;;  %vm446_vm5 = vweird.f32 %v1203_v32 }
  0x4b   : > { %vm460_vm6 = vweird.f32 %v1460_v38  ;;  %v479_v54 = vand.u32 2147483647, %v1472_v43  ;;  %v481_v29 = vand.u32 2147483648, %v1472_v43  ;;  %v403_v57 = vsel %vm1605_vm1, %v1197_v35, %v399_v62  ;;  %vm1651_vm11 = vmor %vm445_vm15, %vm446_vm5 }
  0x4c   : > { %v1205_v30 = vpop.eup %1204  ;;  %v414_v19 = vadd.f32 %v1199_v49, %v413_v39  ;;  %v428_v47 = vmul.f32 %v1201_v42, %v427_v25  ;;  %v442_v50 = vsub.f32 1.0, %v441_v63  ;;  %vm1637_vm10 = vcmp.eq.f32.partialorder %v464_v13, 8.507059e+37 }
  0x4d   : > { %v456_v46 = vmul.f32 %v1205_v30, %v1460_v38  ;;  %v467_v60 = vor.u32 1.1754944e-38, %v466_v33  ;;  %vm475_vm12 = vweird.f32 %v1472_v43  ;;  %v1644_v35 = vsel %vm1571_vm9, %v407_v45, %v403_v57 }
  0x4e   : > { %v418_v23 = vsel %vm1620_vm4, %v1199_v49, %v414_v19  ;;  %v429_v55 = vadd.f32 %v1201_v42, %v428_v47  ;;  %v443_v62 = vmul.f32 %v1203_v32, %v442_v50  ;;  %vm461_vm14 = vweird.f32 %v1205_v30 }
  0x4f   : > { %v1207_v39 = vpop.eup %1206  ;;  %v457_v33 = vsub.f32 1.0, %v456_v46  ;;  %vm1655_vm1 = vcmp.eq.f32.partialorder %v479_v54, 8.507059e+37  ;;  %1208 = vrcp.f32 %v1494_v0  ;;  %v482_v63 = vor.u32 1.1754944e-38, %v481_v29  ;;  %vm1671_vm9 = vmor %vm460_vm6, %vm461_vm14 }
  0x50   : > { %v433_v21 = vsel %vm1632_vm8, %v1201_v42, %v429_v55  ;;  %v444_v45 = vadd.f32 %v1203_v32, %v443_v62  ;;  %v471_v49 = vmul.f32 %v1207_v39, %v1472_v43  ;;  %v423_v31 = vsel %vm1587_vm13, %v422_v48, %v418_v23 }
  0x51   : > { %v458_v44 = vmul.f32 %v1205_v30, %v457_v33  ;;  %v494_v46 = vand.u32 2147483647, %v1494_v0  ;;  %v496_v54 = vand.u32 2147483648, %v1494_v0  ;;  %vm476_vm15 = vweird.f32 %v1207_v39 }
  0x52   : > { %v448_v57 = vsel %vm1651_vm11, %v1203_v32, %v444_v45  ;;  %v472_v42 = vsub.f32 1.0, %v471_v49  ;;  %1210 = vrcp.f32 %v1501_v34  ;;  %v438_v48 = vsel %vm1598_vm0, %v437_v58, %v433_v21  ;;  %vm1688_vm0 = vmor %vm475_vm12, %vm476_vm15 }
  0x53   : > { %v459_v26 = vadd.f32 %v1205_v30, %v458_v44  ;;  %vm490_vm13 = vweird.f32 %v1494_v0  ;;  %vm505_vm2 = vweird.f32 %v1501_v34  ;;  %v453_v32 = vsel %vm1609_vm3, %v452_v27, %v448_v57 }
  0x54   : > { %v473_v38 = vmul.f32 %v1207_v39, %v472_v42  ;;  %v509_v29 = vand.u32 2147483647, %v1501_v34  ;;  %v511_v47 = vand.u32 2147483648, %v1501_v34  ;;  %vm1692_vm4 = vcmp.eq.f32.partialorder %v494_v46, 8.507059e+37 }
  0x55   : > { %v1209_v50 = vpop.eup %1208  ;;  %v463_v18 = vsel %vm1671_vm9, %v1205_v30, %v459_v26  ;;  %v497_v27 = vor.u32 1.1754944e-38, %v496_v54  ;;  %vm515_vm3 = vcmp.ge.f32.partialorder %v1342_v1, 0.0  ;;  %vm516_vm5 = vcmp.ge.f32.partialorder %v1344_v2, 0.0 }
  0x56   : > { %v474_v59 = vadd.f32 %v1207_v39, %v473_v38  ;;  %v486_v23 = vmul.f32 %v1209_v50, %v1494_v0  ;;  %vm517_vm6 = vcmp.ge.f32.partialorder %v1346_v3, 0.0  ;;  %v468_v43 = vsel %vm1637_vm10, %v467_v60, %v463_v18 }
  0x57   : > { %vm491_vm8 = vweird.f32 %v1209_v50  ;;  %vm1702_vm12 = vcmp.eq.f32.partialorder %v509_v29, 8.507059e+37  ;;  %vm518_vm11 = vcmp.ge.f32.partialorder %v1348_v4, 0.0  ;;  %v512_v33 = vor.u32 1.1754944e-38, %v511_v47 }
  0x58   : > { %v1211_v55 = vpop.eup %1210  ;;  %v478_v62 = vsel %vm1688_vm0, %v1207_v39, %v474_v59  ;;  %v487_v13 = vsub.f32 1.0, %v486_v23  ;;  %vm519_vm14 = vcmp.ge.f32.partialorder %v1350_v5, 0.0  ;;  %vm520_vm10 = vcmp.ge.f32.partialorder %v1352_v6, 0.0  ;;  %vm1722_vm9 = vmor %vm490_vm13, %vm491_vm8 }
  0x59   : > { %v483_v21 = vsel %vm1655_vm1, %v482_v63, %v478_v62  ;;  %v501_v60 = vmul.f32 %v1211_v55, %v1501_v34  ;;  %v523_v22 = vmul.f32 %v1397_v52, %v1644_v35  ;;  %v524_v49 = vmul.f32 %v1405_v56, %v423_v31  ;;  %v2481_v62 = vld [vmem:[#allocation4_spill] sm:$0xff] }
  0x5a   : > { %v488_v45 = vmul.f32 %v1209_v50, %v487_v13  ;;  %v525_v44 = vmul.f32 %v1415_v61, %v438_v48  ;;  %v526_v39 = vmul.f32 %v1423_v17, %v453_v32  ;;  %vm506_vm1 = vweird.f32 %v1211_v55 }
  0x5b   : > { %v502_v63 = vsub.f32 1.0, %v501_v60  ;;  %v527_v46 = vmul.f32 %v1438_v24, %v468_v43  ;;  %v531_v52 = vsel %vm515_vm3, %v1644_v35, %v523_v22  ;;  %v528_v61 = vmul.f32 %v1446_v28, %v483_v21  ;;  %vm1744_vm13 = vmor %vm505_vm2, %vm506_vm1  ;;  %v1113_v28 = vld [vmem:[%s1330_s19 + $0x8] sm:$0xff] }
  0x5c   : > { %v489_v56 = vadd.f32 %v1209_v50, %v488_v45  ;;  %v532_v17 = vsel %vm516_vm5, %v423_v31, %v524_v49  ;;  %v533_v0 = vsel %vm517_vm6, %v438_v48, %v525_v44  ;;  %vm521_vm15 = vcmp.ge.f32.partialorder %v1354_v7, 0.0  ;;  %v2484_v45 = vld [vmem:[#allocation8_spill] sm:$0xff] }
  0x5d   : > { %v503_v54 = vmul.f32 %v1211_v55, %v502_v63  ;;  %v534_v57 = vsel %vm518_vm11, %v453_v32, %v526_v39  ;;  %v540_v24 = vadd.f32 %v1548_v14, %v1538_v51  ;;  %v551_v31 = vmul.f32 %v531_v52, %v1358_v9  ;;  %v2485_v39 = vld [vmem:[#allocation5_spill] sm:$0xff] }
  0x5e   : > { %v493_v35 = vsel %vm1722_vm9, %v1209_v50, %v489_v56  ;;  %v552_v19 = vmul.f32 %v532_v17, %v1360_v10  ;;  %v553_v42 = vmul.f32 %v533_v0, %v1362_v11  ;;  %v535_v51 = vsel %vm519_vm14, %v468_v43, %v527_v46  ;;  %v2486_v46 = vld [vmem:[#allocation9_spill] sm:$0xff] }
  0x5f   : > { %v498_v48 = vsel %vm1692_vm4, %v497_v27, %v493_v35  ;;  %v504_v26 = vadd.f32 %v1211_v55, %v503_v54  ;;  %v541_v14 = vadd.f32 %v540_v24, %v1551_v15  ;;  %v536_v32 = vsel %vm520_vm10, %v483_v21, %v528_v61  ;;  %v2487_v61 = vld [vmem:[#allocation6_spill] sm:$0xff] }
  0x60   : > { %v529_v34 = vmul.f32 %v1455_v36, %v498_v48  ;;  %v554_v38 = vmul.f32 %v534_v57, %v1364_v12  ;;  %v559_v29 = vadd.f32 %v552_v19, %v551_v31  ;;  %v570_v18 = vadd.f32 %v532_v17, %v531_v52  ;;  %v2480_v36 = vld [vmem:[#allocation3_spill] sm:$0xff] }
  0x61   : > { %v508_v47 = vsel %vm1744_vm13, %v1211_v55, %v504_v26  ;;  %v542_v50 = vadd.f32 %v541_v14, %v1557_v41  ;;  %v581_v58 = vadd.f32 %v1360_v10, %v1358_v9  ;;  %vm522_vm2 = vcmp.ge.f32.partialorder %v2479_v53, 0.0 }
  0x62   : > { %v513_v15 = vsel %vm1702_vm12, %v512_v33, %v508_v47  ;;  %v555_v27 = vmul.f32 %v535_v51, %v2480_v36  ;;  %v560_v59 = vadd.f32 %v559_v29, %v553_v42  ;;  %v537_v43 = vsel %vm521_vm15, %v498_v48, %v529_v34  ;;  %v2482_v33 = vld [vmem:[#allocation7_spill] sm:$0xff]  ;;  %v1115_v42 = vld [vmem:[%s1330_s19 + $0x10] sm:$0xff] }
  0x63   : > { %v530_v23 = vmul.f32 %v1463_v40, %v513_v15  ;;  %v543_v41 = vadd.f32 %v542_v50, %v1562_v8  ;;  %v571_v55 = vadd.f32 %v570_v18, %v533_v0  ;;  %v556_v13 = vmul.f32 %v536_v32, %v2481_v62 }
  0x64   : > { %v561_v21 = vadd.f32 %v560_v59, %v554_v38  ;;  %v582_v30 = vadd.f32 %v581_v58, %v1362_v11  ;;  %v2483_v60 = vsel %vm1533_vm7, %v1545_v16, %v1569_v37  ;;  %v557_v8 = vmul.f32 %v537_v43, %v2485_v39 }
  0x65   : > { %v386_v22 = vadd.f32 %v2483_v60, %v2482_v33  ;;  %v538_v40 = vsel %vm522_vm2, %v513_v15, %v530_v23  ;;  %v544_v49 = vadd.f32 %v543_v41, %v2484_v45  ;;  %v572_v44 = vadd.f32 %v571_v55, %v534_v57 }
  0x66   : > { %v562_v25 = vadd.f32 %v561_v21, %v555_v27  ;;  %v583_v63 = vadd.f32 %v582_v30, %v1364_v12  ;;  %v558_v16 = vmul.f32 %v538_v40, %v2487_v61 }
  0x67   : > { %v545_v52 = vadd.f32 %v544_v49, %v2486_v46  ;;  %v573_v56 = vadd.f32 %v572_v44, %v535_v51  ;;  %v1117_v51 = vld [vmem:[%s1330_s19 + $0x18] sm:$0xff] }
  0x68   : > { %v563_v37 = vadd.f32 %v562_v25, %v556_v13  ;;  %v584_v17 = vadd.f32 %v583_v63, %v2480_v36 }
  0x69   : > { %v546_v0 = vadd.f32 %v545_v52, %v386_v22  ;;  %v574_v54 = vadd.f32 %v573_v56, %v536_v32 }
  0x6a   : > { %v564_v57 = vadd.f32 %v563_v37, %v557_v8  ;;  %v585_v24 = vadd.f32 %v584_v17, %v2481_v62 }
  0x6b   : > { %v547_v35 = vadd.f32 %v546_v0, %v539_v20  ;;  %v575_v31 = vadd.f32 %v574_v54, %v537_v43 }
  0x6c   : > { %v565_v19 = vadd.f32 %v564_v57, %v558_v16  ;;  %v586_v48 = vadd.f32 %v585_v24, %v2485_v39 }
  0x6d   : > { %548 = vst [vmem:[%s1330_s19] sm:$0xff] %v547_v35  ;;  %v576_v26 = vadd.f32 %v575_v31, %v538_v40 }
  0x6e   : > { %v566_v14 = vadd.f32 %v1113_v28, %v565_v19  ;;  %v587_v34 = vadd.f32 %v586_v48, %v2487_v61 }
  0x6f   : > { %v577_v38 = vadd.f32 %v1115_v42, %v576_v26 }
  0x70   : > { %1114 = vst [vmem:[%s1330_s19 + $0x8] sm:$0xff] %v566_v14  ;;  %v588_v32 = vadd.f32 %v1117_v51, %v587_v34 }
  0x71   : > { %1116 = vst [vmem:[%s1330_s19 + $0x10] sm:$0xff] %v577_v38 }
  0x72   : > { %1118 = vst [vmem:[%s1330_s19 + $0x18] sm:$0xff] %v588_v32 }
  0x73 PF: > { %593 = sbr.rel (%p217_p5) target bundleno = 230 (0xe6), region = 40 }
  0x78   : > { %v594_v29 = vlaneseq  ;;  %s1120_s27 = sshll.u32 %s1274_s9, 6  ;;  %v2495_v57 = vld [vmem:[#allocation2_spill] sm:$0xff] }
  0x79   : > { %v606_v50 = vstv %s1120_s27 }
  0x7a   : > { %v595_v47 = vshrl.u32 %v594_v29, 7  ;;  %v604_v18 = vand.u32 127, %v594_v29 }
  0x7c   : > { %v596_v58 = vadd.s32 8, %v595_v47  ;;  %v597_v15 = vadd.s32 16, %v595_v47  ;;  %v598_v53 = vadd.s32 24, %v595_v47  ;;  %v599_v36 = vadd.s32 32, %v595_v47 }
  0x7d   : > { %v600_v27 = vadd.s32 40, %v595_v47  ;;  %v601_v59 = vadd.s32 48, %v595_v47  ;;  %v602_v23 = vadd.s32 56, %v595_v47  ;;  %v607_v43 = vadd.s32 %v606_v50, %v595_v47 }
  0x7e   : > { %v608_v41 = vadd.s32 %v606_v50, %v596_v58  ;;  %v609_v55 = vadd.s32 %v606_v50, %v597_v15  ;;  %v610_v62 = vadd.s32 %v606_v50, %v598_v53  ;;  %v611_v13 = vadd.s32 %v606_v50, %v599_v36  ;;  %v2500_v36 = vld [vmem:[#allocation3_spill] sm:$0xff] }
  0x7f   : > { %v612_v21 = vadd.s32 %v606_v50, %v600_v27  ;;  %v613_v30 = vadd.s32 %v606_v50, %v601_v59  ;;  %v614_v33 = vadd.s32 %v606_v50, %v602_v23  ;;  %v615_v60 = vmul.u32 128, %v607_v43  ;;  %v2502_v59 = vld [vmem:[#allocation4_spill] sm:$0xff]  ;;  %v2504_v23 = vld [vmem:[#allocation5_spill] sm:$0xff] }
  0x80   : > { %v616_v22 = vmul.u32 128, %v608_v41  ;;  %v617_v40 = vmul.u32 128, %v609_v55  ;;  %v618_v45 = vmul.u32 128, %v610_v62  ;;  %v619_v49 = vmul.u32 128, %v611_v13  ;;  %v2506_v41 = vld [vmem:[#allocation6_spill] sm:$0xff] }
  0x81   : > { %v620_v44 = vmul.u32 128, %v612_v21  ;;  %v621_v39 = vmul.u32 128, %v613_v30  ;;  %v622_v8 = vmul.u32 128, %v614_v33  ;;  %v1801_v25 = vadd.s32 %v615_v60, %v604_v18 }
  0x82   : > { %v1803_v63 = vadd.s32 %v616_v22, %v604_v18  ;;  %v1805_v46 = vadd.s32 %v617_v40, %v604_v18  ;;  %v1807_v52 = vadd.s32 %v618_v45, %v604_v18  ;;  %v1809_v56 = vadd.s32 %v619_v49, %v604_v18 }
  0x83   : > { %v1811_v20 = vadd.s32 %v620_v44, %v604_v18  ;;  %v1813_v61 = vadd.s32 %v621_v39, %v604_v18  ;;  %v1815_v16 = vadd.s32 %v622_v8, %v604_v18  ;;  %vm631_vm7 = vcmp.lt.s32.totalorder %v1801_v25, 8192 }
  0x84   : > { %2488 = vst [vmem:[#allocation10_spill] sm:$0xff] %v1803_v63  ;;  %vm2422_vm0 = vcmp.lt.s32.totalorder %v1803_v63, 8192  ;;  %vm2421_vm4 = vcmp.lt.s32.totalorder %v1805_v46, 8192  ;;  %vm2420_vm3 = vcmp.lt.s32.totalorder %v1807_v52, 8192  ;;  %vm2419_vm5 = vcmp.lt.s32.totalorder %v1809_v56, 8192 }
  0x85   : > { %2489 = vst [vmem:[#allocation11_spill] sm:$0xff] %v1805_v46  ;;  %vm2418_vm6 = vcmp.lt.s32.totalorder %v1811_v20, 8192  ;;  %vm2417_vm8 = vcmp.lt.s32.totalorder %v1813_v61, 8192  ;;  %vm2416_vm12 = vcmp.lt.s32.totalorder %v1815_v16, 8192  ;;  %v1828_v37 = vsel %vm631_vm7, %v1342_v1, 0.0 }
  0x86   : > { %2490 = vst [vmem:[#allocation12_spill] sm:$0xff] %v1807_v52  ;;  %v1833_v17 = vsel %vm2422_vm0, %v1344_v2, 0.0  ;;  %v1838_v0 = vsel %vm2421_vm4, %v1346_v3, 0.0  ;;  %v1843_v54 = vsel %vm2420_vm3, %v1348_v4, 0.0  ;;  %v1848_v1 = vsel %vm2419_vm5, %v1350_v5, 0.0 }
  0x87   : > { %2491 = vst [vmem:[#allocation13_spill] sm:$0xff] %v1809_v56  ;;  %v1853_v2 = vsel %vm2418_vm6, %v1352_v6, 0.0  ;;  %v1858_v3 = vsel %vm2417_vm8, %v1354_v7, 0.0  ;;  %v1863_v4 = vsel %vm2416_vm12, %v2495_v57, 0.0  ;;  %v655_v24 = vand.u32 2147483647, %v1828_v37 }
  0x88   : > { %2492 = vst [vmem:[#allocation14_spill] sm:$0xff] %v1811_v20  ;;  %v656_v5 = vand.u32 2147483647, %v1833_v17  ;;  %v657_v35 = vand.u32 2147483647, %v1838_v0  ;;  %v1876_v29 = vsel %vm631_vm7, %v1358_v9, 0.0 }
  0x89   : > { %2493 = vst [vmem:[#allocation15_spill] sm:$0xff] %v1813_v61  ;;  %v658_v28 = vand.u32 2147483647, %v1843_v54  ;;  %v659_v6 = vand.u32 2147483647, %v1848_v1  ;;  %v663_v19 = vsub.f32 0.0, %v655_v24  ;;  %v695_v62 = vmul.f32 %v1876_v29, %v1828_v37 }
  0x8a   : > { %2494 = vst [vmem:[#allocation16_spill] sm:$0xff] %v1815_v16  ;;  %v660_v31 = vand.u32 2147483647, %v1853_v2  ;;  %v661_v7 = vand.u32 2147483647, %v1858_v3  ;;  %v664_v42 = vsub.f32 0.0, %v656_v5 }
  0x8b   : > { %v665_v48 = vsub.f32 0.0, %v657_v35  ;;  %v662_v26 = vand.u32 2147483647, %v1863_v4  ;;  %v666_v51 = vsub.f32 0.0, %v658_v28  ;;  %v667_v14 = vsub.f32 0.0, %v659_v6  ;;  %2496 = vst [vmem:[#allocation17_spill] sm:$0xff] %v1876_v29 }
  0x8c   : > { %v668_v34 = vsub.f32 0.0, %v660_v31  ;;  %v671_v38 = vmul.f32 1.442695, %v663_v19  ;;  %v673_v32 = vmul.f32 1.442695, %v664_v42  ;;  %v1881_v47 = vsel %vm2422_vm0, %v1360_v10, 0.0 }
  0x8d   : > { %2497 = vst [vmem:[#allocation18_spill] sm:$0xff] %v1881_v47  ;;  %v675_v50 = vmul.f32 1.442695, %v665_v48  ;;  %v677_v18 = vmul.f32 1.442695, %v666_v51  ;;  %v1886_v58 = vsel %vm2421_vm4, %v1362_v11, 0.0  ;;  %v696_v13 = vmul.f32 %v1881_v47, %v1833_v17 }
  0x8e   : > { %2498 = vst [vmem:[#allocation19_spill] sm:$0xff] %v1886_v58  ;;  %v669_v15 = vsub.f32 0.0, %v661_v7  ;;  %1212 = vpow2.f32 %v671_v38  ;;  %v679_v53 = vmul.f32 1.442695, %v667_v14  ;;  %v1891_v9 = vsel %vm2420_vm3, %v1364_v12, 0.0 }
  0x8f   : > { %2499 = vst [vmem:[#allocation20_spill] sm:$0xff] %v1891_v9  ;;  %v1896_v10 = vsel %vm2419_vm5, %v2500_v36, 0.0  ;;  %v670_v27 = vsub.f32 0.0, %v662_v26  ;;  %1214 = vpow2.f32 %v673_v32  ;;  %v1901_v11 = vsel %vm2418_vm6, %v2502_v59, 0.0 }
  0x90   : > { %2501 = vst [vmem:[#allocation21_spill] sm:$0xff] %v1896_v10  ;;  %v1906_v43 = vsel %vm2417_vm8, %v2504_v23, 0.0  ;;  %1216 = vpow2.f32 %v675_v50  ;;  %v681_v12 = vmul.f32 1.442695, %v668_v34  ;;  %v1911_v55 = vsel %vm2416_vm12, %v2506_v41, 0.0 }
  0x91   : > { %2503 = vst [vmem:[#allocation22_spill] sm:$0xff] %v1901_v11  ;;  %1218 = vpow2.f32 %v677_v18  ;;  %v683_v21 = vmul.f32 1.442695, %v669_v15  ;;  %v687_v30 = vmax.f32 %v1828_v37, 0.0  ;;  %v697_v33 = vmul.f32 %v1886_v58, %v1838_v0 }
  0x92   : > { %2505 = vst [vmem:[#allocation23_spill] sm:$0xff] %v1906_v43  ;;  %1220 = vpow2.f32 %v679_v53  ;;  %v685_v60 = vmul.f32 1.442695, %v670_v27  ;;  %v688_v22 = vmax.f32 %v1833_v17, 0.0  ;;  %v689_v40 = vmax.f32 %v1838_v0, 0.0 }
  0x93   : > { %2507 = vst [vmem:[#allocation24_spill] sm:$0xff] %v1911_v55  ;;  %v690_v45 = vmax.f32 %v1843_v54, 0.0  ;;  %1222 = vpow2.f32 %v681_v12  ;;  %v691_v44 = vmax.f32 %v1848_v1, 0.0  ;;  %v692_v39 = vmax.f32 %v1853_v2, 0.0 }
  0x94   : > { %v1923_v49 = vpop.eup %1212  ;;  %v693_v8 = vmax.f32 %v1858_v3, 0.0  ;;  %v694_v24 = vmax.f32 %v1863_v4, 0.0  ;;  %v698_v5 = vmul.f32 %v1891_v9, %v1843_v54  ;;  %v699_v35 = vmul.f32 %v1896_v10, %v1848_v1 }
  0x95   : > { %v1928_v57 = vpop.eup %1214  ;;  %v700_v28 = vmul.f32 %v1901_v11, %v1853_v2  ;;  %1224 = vpow2.f32 %v683_v21  ;;  %v701_v31 = vmul.f32 %v1906_v43, %v1858_v3  ;;  %v702_v7 = vmul.f32 %v1911_v55, %v1863_v4 }
  0x96   : > { %v1937_v6 = vpop.eup %1216  ;;  %v1944_v19 = vadd.f32 1.0, %v1923_v49  ;;  %1226 = vpow2.f32 %v685_v60  ;;  %v1948_v48 = vsub.f32 %v687_v30, %v695_v62  ;;  %v714_v26 = vmul.f32 -0.5, %v1923_v49 }
  0x97   : > { %v1946_v42 = vpop.eup %1218  ;;  %v1952_v51 = vadd.f32 1.0, %v1928_v57  ;;  %v1956_v34 = vsub.f32 %v688_v22, %v696_v13  ;;  %v723_v38 = vmul.f32 -0.5, %v1928_v57  ;;  %v732_v32 = vmul.f32 -0.5, %v1937_v6 }
  0x98   : > { %v1954_v14 = vpop.eup %1220  ;;  %1228 = vlog2.f32 %v1944_v19  ;;  %v1961_v50 = vsub.f32 %v689_v40, %v697_v33  ;;  %v1963_v18 = vsub.f32 %v690_v45, %v698_v5  ;;  %v1967_v15 = vadd.f32 1.0, %v1937_v6 }
  0x99   : > { %1230 = vlog2.f32 %v1952_v51  ;;  %v1969_v53 = vpop.eup %1222  ;;  %v1971_v36 = vsub.f32 %v691_v44, %v699_v35  ;;  %v717_v27 = vand.u32 2147483647, %v1923_v49  ;;  %v726_v59 = vand.u32 2147483647, %v1928_v57 }
  0x9a   : > { %v1976_v23 = vadd.f32 1.0, %v1946_v42  ;;  %v1978_v12 = vsub.f32 %v692_v39, %v700_v28  ;;  %v715_v41 = vadd.f32 1.0, %v714_v26  ;;  %1232 = vlog2.f32 %v1967_v15 }
  0x9b   : > { %v1982_v62 = vadd.f32 1.0, %v1954_v14  ;;  %v1984_v13 = vpop.eup %1224  ;;  %v724_v21 = vadd.f32 1.0, %v723_v38  ;;  %v733_v30 = vadd.f32 1.0, %v732_v32  ;;  %v735_v33 = vand.u32 2147483647, %v1937_v6 }
  0x9c   : > { %1234 = vlog2.f32 %v1976_v23  ;;  %v1988_v60 = vpop.eup %1226  ;;  %v1990_v22 = vsub.f32 %v693_v8, %v701_v31  ;;  %v741_v40 = vmul.f32 -0.5, %v1946_v42  ;;  %v1995_v45 = vadd.f32 1.0, %v1969_v53 }
  0x9d   : > { %1236 = vlog2.f32 %v1982_v62  ;;  %v1997_v39 = vsub.f32 %v694_v24, %v702_v7  ;;  %vm1999_vm11 = vcmp.lt.f32.partialorder %v717_v27, 0.0004427343  ;;  %vm2003_vm14 = vcmp.lt.f32.partialorder %v726_v59, 0.0004427343 }
  0x9e   : > { %v1229_v44 = vpop.eup %1228  ;;  %v750_v8 = vmul.f32 -0.5, %v1954_v14  ;;  %v716_v31 = vmul.f32 %v1923_v49, %v715_v41  ;;  %v744_v26 = vand.u32 2147483647, %v1946_v42  ;;  %1238 = vlog2.f32 %v1995_v45 }
  0x9f   : > { %v1231_v28 = vpop.eup %1230  ;;  %v759_v24 = vmul.f32 -0.5, %v1969_v53  ;;  %v725_v7 = vmul.f32 %v1928_v57, %v724_v21  ;;  %v734_v38 = vmul.f32 %v1937_v6, %v733_v30  ;;  %vm2014_vm10 = vcmp.lt.f32.partialorder %v735_v33, 0.0004427343 }
  0xa0   : > { %v2019_v27 = vadd.f32 1.0, %v1984_v13  ;;  %v1233_v59 = vpop.eup %1232  ;;  %v713_v55 = vmul.f32 0.6931472, %v1229_v44  ;;  %v742_v41 = vadd.f32 1.0, %v741_v40  ;;  %v753_v43 = vand.u32 2147483647, %v1954_v14 }
  0xa1   : > { %v768_v11 = vmul.f32 -0.5, %v1984_v13  ;;  %v722_v9 = vmul.f32 0.6931472, %v1231_v28  ;;  %v751_v16 = vadd.f32 1.0, %v750_v8  ;;  %v2025_v21 = vadd.f32 1.0, %v1988_v60 }
  0xa2   : > { %v1235_v10 = vpop.eup %1234  ;;  %1240 = vlog2.f32 %v2019_v27  ;;  %vm2027_vm9 = vcmp.lt.f32.partialorder %v744_v26, 0.0004427343  ;;  %v760_v61 = vadd.f32 1.0, %v759_v24  ;;  %v762_v40 = vand.u32 2147483647, %v1969_v53 }
  0xa3   : > { %v1237_v30 = vpop.eup %1236  ;;  %v777_v44 = vmul.f32 -0.5, %v1988_v60  ;;  %v731_v58 = vmul.f32 0.6931472, %v1233_v59  ;;  %v769_v20 = vadd.f32 1.0, %v768_v11  ;;  %v771_v28 = vand.u32 2147483647, %v1984_v13 }
  0xa4   : > { %1242 = vlog2.f32 %v2025_v21  ;;  %v1239_v8 = vpop.eup %1238  ;;  %v719_v47 = vsel %vm1999_vm11, %v716_v31, %v713_v55  ;;  %v740_v29 = vmul.f32 0.6931472, %v1235_v10  ;;  %v743_v26 = vmul.f32 %v1946_v42, %v742_v41 }
  0xa5   : > { %vm2038_vm1 = vcmp.lt.f32.partialorder %v753_v43, 0.0004427343  ;;  %v728_v24 = vsel %vm2003_vm14, %v725_v7, %v722_v9  ;;  %v749_v59 = vmul.f32 0.6931472, %v1237_v30  ;;  %v752_v11 = vmul.f32 %v1954_v14, %v751_v16 }
  0xa6   : > { %v780_v52 = vand.u32 2147483647, %v1988_v60  ;;  %v758_v46 = vmul.f32 0.6931472, %v1239_v8  ;;  %v761_v63 = vmul.f32 %v1969_v53, %v760_v61  ;;  %v778_v5 = vadd.f32 1.0, %v777_v44 }
  0xa7   : > { %1244 = vrcp.f32 %v1944_v19  ;;  %v737_v43 = vsel %vm2014_vm10, %v734_v38, %v731_v58  ;;  %vm2050_vm15 = vcmp.lt.f32.partialorder %v762_v40, 0.0004427343  ;;  %v770_v9 = vmul.f32 %v1984_v13, %v769_v20 }
  0xa8   : > { %v1241_v10 = vpop.eup %1240  ;;  %vm2055_vm13 = vcmp.lt.f32.partialorder %v771_v28, 0.0004427343  ;;  %v746_v61 = vsel %vm2027_vm9, %v743_v26, %v740_v29  ;;  %v2062_v31 = vadd.f32 %v719_v47, %v1948_v48  ;;  %1246 = vrcp.f32 %v1952_v51 }
  0xa9   : > { %v767_v35 = vmul.f32 0.6931472, %v1241_v10  ;;  %v755_v7 = vsel %vm2038_vm1, %v752_v11, %v749_v59  ;;  %vm2067_vm2 = vcmp.lt.f32.partialorder %v780_v52, 0.0004427343  ;;  %v2072_v20 = vadd.f32 %v728_v24, %v1956_v34 }
  0xaa   : > { %v1243_v58 = vpop.eup %1242  ;;  %v810_v32 = vand.u32 2147483648, %v1944_v19  ;;  %v764_v29 = vsel %vm2050_vm15, %v761_v63, %v758_v46  ;;  %v779_v47 = vmul.f32 %v1988_v60, %v778_v5  ;;  %v2079_v48 = vadd.f32 %v737_v43, %v1961_v50 }
  0xab   : > { %1248 = vrcp.f32 %v1967_v15  ;;  %v773_v52 = vsel %vm2055_vm13, %v770_v9, %v767_v35  ;;  %v2085_v56 = vadd.f32 %v746_v61, %v1963_v18  ;;  %v808_v34 = vand.u32 2147483647, %v1944_v19 }
  0xac   : > { %v825_v41 = vand.u32 2147483648, %v1952_v51  ;;  %v776_v63 = vmul.f32 0.6931472, %v1243_v58  ;;  %v2092_v46 = vadd.f32 %v755_v7, %v1971_v36  ;;  %vm804_vm11 = vweird.f32 %v1944_v19 }
  0xad   : > { %v2089_v30 = vpop.eup %1244  ;;  %1250 = vrcp.f32 %v1976_v23  ;;  %v2097_v50 = vadd.f32 %v764_v29, %v1978_v12  ;;  %v2101_v33 = vor.u32 1.1754944e-38, %v810_v32  ;;  %vm819_vm14 = vweird.f32 %v1952_v51 }
  0xae   : > { %v800_v18 = vmul.f32 %v2089_v30, %v1944_v19  ;;  %v2104_v40 = vpop.eup %1246  ;;  %v2107_v44 = vadd.f32 %v773_v52, %v1990_v22  ;;  %v823_v36 = vand.u32 2147483647, %v1952_v51  ;;  %vm834_vm10 = vweird.f32 %v1967_v15 }
  0xaf   : > { %1252 = vrcp.f32 %v1982_v62  ;;  %vm2112_vm9 = vcmp.eq.f32.partialorder %v808_v34, 8.507059e+37  ;;  %v815_v8 = vmul.f32 %v2104_v40, %v1952_v51  ;;  %v2118_v26 = vor.u32 1.1754944e-38, %v825_v41 }
  0xb0   : > { %v801_v12 = vsub.f32 1.0, %v800_v18  ;;  %v838_v24 = vand.u32 2147483647, %v1967_v15  ;;  %v782_v59 = vsel %vm2067_vm2, %v779_v47, %v776_v63  ;;  %vm805_vm1 = vweird.f32 %v2089_v30 }
  0xb1   : > { %v2121_v22 = vpop.eup %1248  ;;  %v840_v11 = vand.u32 2147483648, %v1967_v15  ;;  %vm849_vm15 = vweird.f32 %v1976_v23  ;;  %v816_v10 = vsub.f32 1.0, %v815_v8  ;;  %v853_v55 = vand.u32 2147483647, %v1976_v23  ;;  %vm2151_vm13 = vmor %vm804_vm11, %vm805_vm1 }
  0xb2   : > { %v802_v5 = vmul.f32 %v2089_v30, %v801_v12  ;;  %v830_v43 = vmul.f32 %v2121_v22, %v1967_v15  ;;  %v855_v16 = vand.u32 2147483648, %v1976_v23  ;;  %v868_v61 = vand.u32 2147483647, %v1982_v62 }
  0xb3   : > { %v2132_v9 = vpop.eup %1250  ;;  %v870_v35 = vand.u32 2147483648, %v1982_v62  ;;  %1254 = vrcp.f32 %v1995_v45  ;;  %v817_v7 = vmul.f32 %v2104_v40, %v816_v10  ;;  %v2145_v47 = vadd.f32 %v782_v59, %v1997_v39 }
  0xb4   : > { %v803_v58 = vadd.f32 %v2089_v30, %v802_v5  ;;  %v831_v38 = vsub.f32 1.0, %v830_v43  ;;  %v845_v32 = vmul.f32 %v2132_v9, %v1976_v23  ;;  %vm820_vm2 = vweird.f32 %v2104_v40 }
  0xb5   : > { %v2142_v29 = vpop.eup %1252  ;;  %vm2156_vm12 = vcmp.eq.f32.partialorder %v823_v36, 8.507059e+37  ;;  %v841_v41 = vor.u32 1.1754944e-38, %v840_v11  ;;  %1256 = vrcp.f32 %v2019_v27  ;;  %vm2162_vm8 = vcmp.eq.f32.partialorder %v838_v24, 8.507059e+37  ;;  %vm2180_vm5 = vmor %vm819_vm14, %vm820_vm2 }
  0xb6   : > { %v832_v39 = vmul.f32 %v2121_v22, %v831_v38  ;;  %v846_v19 = vsub.f32 1.0, %v845_v32  ;;  %vm2166_vm11 = vcmp.eq.f32.partialorder %v853_v55, 8.507059e+37  ;;  %vm864_vm1 = vweird.f32 %v1982_v62 }
  0xb7   : > { %v818_v36 = vadd.f32 %v2104_v40, %v817_v7  ;;  %vm835_vm6 = vweird.f32 %v2121_v22  ;;  %v856_v12 = vor.u32 1.1754944e-38, %v855_v16  ;;  %v860_v8 = vmul.f32 %v2142_v29, %v1982_v62 }
  0xb8   : > { %v807_v24 = vsel %vm2151_vm13, %v2089_v30, %v803_v58  ;;  %v847_v11 = vmul.f32 %v2132_v9, %v846_v19  ;;  %vm850_vm3 = vweird.f32 %v2132_v9  ;;  %vm2186_vm4 = vcmp.eq.f32.partialorder %v868_v61, 8.507059e+37  ;;  %vm2195_vm14 = vmor %vm834_vm10, %vm835_vm6 }
  0xb9   : > { %v871_v10 = vor.u32 1.1754944e-38, %v870_v35  ;;  %v1255_v43 = vpop.eup %1254  ;;  %v833_v55 = vadd.f32 %v2121_v22, %v832_v39  ;;  %v861_v16 = vsub.f32 1.0, %v860_v8  ;;  %vm879_vm13 = vweird.f32 %v1995_v45  ;;  %vm2215_vm6 = vmor %vm849_vm15, %vm850_vm3 }
  0xba   : > { %v883_v51 = vand.u32 2147483647, %v1995_v45  ;;  %v848_v61 = vadd.f32 %v2132_v9, %v847_v11  ;;  %vm865_vm2 = vweird.f32 %v2142_v29  ;;  %v875_v35 = vmul.f32 %v1255_v43, %v1995_v45 }
  0xbb   : > { %v885_v58 = vand.u32 2147483648, %v1995_v45  ;;  %v1257_v7 = vpop.eup %1256  ;;  %v2206_v38 = vsel %vm2112_vm9, %v2101_v33, %v807_v24  ;;  %v822_v15 = vsel %vm2180_vm5, %v2104_v40, %v818_v36  ;;  %v862_v52 = vmul.f32 %v2142_v29, %v861_v16  ;;  %vm2231_vm3 = vmor %vm864_vm1, %vm865_vm2 }
  0xbc   : > { %vm894_vm10 = vweird.f32 %v2019_v27  ;;  %v876_v39 = vsub.f32 1.0, %v875_v35  ;;  %vm880_vm0 = vweird.f32 %v1255_v43  ;;  %v890_v33 = vmul.f32 %v1257_v7, %v2019_v27 }
  0xbd   : > { %v898_v28 = vand.u32 2147483647, %v2019_v27  ;;  %v837_v40 = vsel %vm2195_vm14, %v2121_v22, %v833_v55  ;;  %v863_v23 = vadd.f32 %v2142_v29, %v862_v52  ;;  %v900_v36 = vand.u32 2147483648, %v2019_v27  ;;  %vm2242_vm9 = vmor %vm879_vm13, %vm880_vm0 }
  0xbe   : > { %1258 = vrcp.f32 %v2025_v21  ;;  %v852_v8 = vsel %vm2215_vm6, %v2132_v9, %v848_v61  ;;  %v877_v24 = vmul.f32 %v1255_v43, %v876_v39  ;;  %v891_v22 = vsub.f32 1.0, %v890_v33 }
  0xbf   : > { %vm895_vm5 = vweird.f32 %v1257_v7  ;;  %vm2246_vm15 = vcmp.eq.f32.partialorder %v883_v51, 8.507059e+37  ;;  %v886_v11 = vor.u32 1.1754944e-38, %v885_v58  ;;  %v913_v55 = vand.u32 2147483647, %v2025_v21 }
  0xc0   : > { %v915_v16 = vand.u32 2147483648, %v2025_v21  ;;  %v827_v9 = vsel %vm2156_vm12, %v2118_v26, %v822_v15  ;;  %v867_v45 = vsel %vm2231_vm3, %v2142_v29, %v863_v23  ;;  %v878_v30 = vadd.f32 %v1255_v43, %v877_v24  ;;  %vm2264_vm0 = vmor %vm894_vm10, %vm895_vm5  ;;  %v2554_v23 = vld [vmem:[#allocation10_spill] sm:$0xff] }
  0xc1   : > { %v892_v61 = vmul.f32 %v1257_v7, %v891_v22  ;;  %v842_v51 = vsel %vm2162_vm8, %v841_v41, %v837_v40  ;;  %v857_v35 = vsel %vm2166_vm11, %v856_v12, %v852_v8  ;;  %vm899_vm1 = vcmp.eq.f32.partialorder %v898_v28, 8.507059e+37 }
  0xc2   : > { %v901_v26 = vor.u32 1.1754944e-38, %v900_v36  ;;  %v882_v34 = vsel %vm2242_vm9, %v1255_v43, %v878_v30  ;;  %vm909_vm12 = vweird.f32 %v2025_v21  ;;  %vm919_vm13 = vcmp.ge.f32.partialorder %v1828_v37, 0.0  ;;  %v2556_v36 = vld [vmem:[#allocation11_spill] sm:$0xff]  ;;  %v2558_v37 = vld [vmem:[#allocation12_spill] sm:$0xff]  ;;  %v2563_v30 = vld [vmem:[#allocation18_spill] sm:$0xff] }
  0xc3   : > { %v893_v29 = vadd.f32 %v1257_v7, %v892_v61  ;;  %v872_v63 = vsel %vm2186_vm4, %v871_v10, %v867_v45  ;;  %vm2274_vm8 = vcmp.eq.f32.partialorder %v913_v55, 8.507059e+37  ;;  %v916_v18 = vor.u32 1.1754944e-38, %v915_v16 }
  0xc4   : > { %v1259_v41 = vpop.eup %1258  ;;  %vm920_vm11 = vcmp.ge.f32.partialorder %v1833_v17, 0.0  ;;  %v887_v12 = vsel %vm2246_vm15, %v886_v11, %v882_v34  ;;  %vm921_vm14 = vcmp.ge.f32.partialorder %v1838_v0, 0.0  ;;  %v927_v5 = vmul.f32 %v1923_v49, %v2206_v38  ;;  %v2560_v11 = vld [vmem:[#allocation13_spill] sm:$0xff] }
  0xc5   : > { %v897_v43 = vsel %vm2264_vm0, %v1257_v7, %v893_v29  ;;  %v905_v15 = vmul.f32 %v1259_v41, %v2025_v21  ;;  %v928_v10 = vmul.f32 %v1928_v57, %v827_v9  ;;  %v929_v52 = vmul.f32 %v1937_v6, %v842_v51  ;;  %v2566_v29 = vld [vmem:[#allocation19_spill] sm:$0xff] }
  0xc6   : > { %v902_v32 = vsel %vm899_vm1, %v901_v26, %v897_v43  ;;  %vm910_vm4 = vweird.f32 %v1259_v41  ;;  %vm922_vm2 = vcmp.ge.f32.partialorder %v1843_v54, 0.0  ;;  %v930_v33 = vmul.f32 %v1946_v42, %v857_v35 }
  0xc7   : > { %v906_v39 = vsub.f32 1.0, %v905_v15  ;;  %vm923_vm6 = vcmp.ge.f32.partialorder %v1848_v1, 0.0  ;;  %vm924_vm10 = vcmp.ge.f32.partialorder %v1853_v2, 0.0  ;;  %vm925_vm3 = vcmp.ge.f32.partialorder %v1858_v3, 0.0  ;;  %vm2299_vm5 = vmor %vm909_vm12, %vm910_vm4  ;;  %v2562_v1 = vld [vmem:[#allocation17_spill] sm:$0xff] }
  0xc8   : > { %v931_v7 = vmul.f32 %v1954_v14, %v872_v63  ;;  %v932_v49 = vmul.f32 %v1969_v53, %v887_v12  ;;  %v933_v57 = vmul.f32 %v1984_v13, %v902_v32  ;;  %vm926_vm9 = vcmp.ge.f32.partialorder %v1863_v4, 0.0 }
  0xc9   : > { %v907_v28 = vmul.f32 %v1259_v41, %v906_v39  ;;  %v935_v54 = vsel %vm919_vm13, %v2206_v38, %v927_v5  ;;  %v936_v42 = vsel %vm920_vm11, %v827_v9, %v928_v10  ;;  %v937_v14 = vsel %vm921_vm14, %v842_v51, %v929_v52  ;;  %v2564_v51 = vld [vmem:[#allocation14_spill] sm:$0xff] }
  0xca   : > { %v938_v13 = vsel %vm922_vm2, %v857_v35, %v930_v33  ;;  %v1285_v40 = vmov 0.0   ;;  %vm2555_vm15 = vcmp.lt.s32.totalorder %v2554_v23, 8192  ;;  %vm2557_vm0 = vcmp.lt.s32.totalorder %v2556_v36, 8192  ;;  %v2574_v36 = vld [vmem:[#allocation23_spill] sm:$0xff] }
  0xcb   : > { %v908_v53 = vadd.f32 %v1259_v41, %v907_v28  ;;  %v1121_v21 = vsel %vm631_vm7, 1.0, %v1285_v40  ;;  %v1122_v19 = vsel %vm2555_vm15, 1.0, %v1285_v40  ;;  %v1123_v8 = vsel %vm2557_vm0, 1.0, %v1285_v40 }
  0xcc   : > { %vm2559_vm1 = vcmp.lt.s32.totalorder %v2558_v37, 8192  ;;  %v959_v17 = vmul.f32 %v1121_v21, %v2062_v31  ;;  %v960_v0 = vmul.f32 %v1122_v19, %v2072_v20  ;;  %v939_v25 = vsel %vm923_vm6, %v872_v63, %v931_v7  ;;  %v2567_v63 = vld [vmem:[#allocation15_spill] sm:$0xff] }
  0xcd   : > { %v1124_v38 = vsel %vm2559_vm1, 1.0, %v1285_v40  ;;  %v912_v24 = vsel %vm2299_vm5, %v1259_v41, %v908_v53  ;;  %v940_v22 = vsel %vm924_vm10, %v887_v12, %v932_v49  ;;  %v941_v59 = vsel %vm925_vm3, %v902_v32, %v933_v57  ;;  %v2571_v32 = vld [vmem:[#allocation20_spill] sm:$0xff]  ;;  %v2572_v49 = vld [vmem:[#allocation21_spill] sm:$0xff] }
  0xce   : > { %v917_v62 = vsel %vm2274_vm8, %v916_v18, %v912_v24  ;;  %vm2561_vm7 = vcmp.lt.s32.totalorder %v2560_v11, 8192  ;;  %v961_v20 = vmul.f32 %v1123_v8, %v2079_v48  ;;  %v967_v55 = vmul.f32 %v1121_v21, %v935_v54  ;;  %v2569_v18 = vld [vmem:[#allocation16_spill] sm:$0xff] }
  0xcf   : > { %v1125_v31 = vsel %vm2561_vm7, 1.0, %v1285_v40  ;;  %v968_v16 = vmul.f32 %v1122_v19, %v936_v42  ;;  %v969_v9 = vmul.f32 %v1123_v8, %v937_v14  ;;  %v970_v45 = vmul.f32 %v1124_v38, %v938_v13  ;;  %v2573_v13 = vld [vmem:[#allocation22_spill] sm:$0xff]  ;;  %v2575_v24 = vld [vmem:[#allocation24_spill] sm:$0xff] }
  0xd0   : > { %v1017_v61 = vadd.f32 %v2563_v30, %v2562_v1  ;;  %v934_v2 = vmul.f32 %v1988_v60, %v917_v62  ;;  %vm2565_vm12 = vcmp.lt.s32.totalorder %v2564_v51, 8192  ;;  %v962_v35 = vmul.f32 %v1124_v38, %v2085_v56 }
  0xd1   : > { %v1126_v3 = vsel %vm2565_vm12, 1.0, %v1285_v40  ;;  %v976_v58 = vadd.f32 %v960_v0, %v959_v17  ;;  %v971_v26 = vmul.f32 %v1125_v31, %v939_v25  ;;  %v987_v34 = vmul.f32 %v967_v55, %v2562_v1  ;;  %v975_v0 = vld [vmem:[%s1330_s19] sm:$0xff] }
  0xd2   : > { %v988_v48 = vmul.f32 %v968_v16, %v2563_v30  ;;  %v989_v41 = vmul.f32 %v969_v9, %v2566_v29  ;;  %vm2568_vm13 = vcmp.lt.s32.totalorder %v2567_v63, 8192  ;;  %vm2570_vm8 = vcmp.lt.s32.totalorder %v2569_v18, 8192 }
  0xd3   : > { %v1127_v27 = vsel %vm2568_vm13, 1.0, %v1285_v40  ;;  %v1128_v12 = vsel %vm2570_vm8, 1.0, %v1285_v40  ;;  %v963_v60 = vmul.f32 %v1125_v31, %v2092_v46  ;;  %v977_v43 = vadd.f32 %v976_v58, %v961_v20  ;;  %v1133_v20 = vld [vmem:[%s1330_s19 + $0x18] sm:$0xff] }
  0xd4   : > { %v972_v15 = vmul.f32 %v1126_v3, %v940_v22  ;;  %v990_v56 = vmul.f32 %v970_v45, %v2571_v32  ;;  %v995_v5 = vadd.f32 %v988_v48, %v987_v34  ;;  %v1006_v10 = vadd.f32 %v968_v16, %v967_v55  ;;  %v1129_v16 = vld [vmem:[%s1330_s19 + $0x8] sm:$0xff] }
  0xd5   : > { %v942_v52 = vsel %vm926_vm9, %v917_v62, %v934_v2  ;;  %v964_v39 = vmul.f32 %v1126_v3, %v2097_v50  ;;  %v978_v33 = vadd.f32 %v977_v43, %v962_v35  ;;  %v1018_v7 = vadd.f32 %v1017_v61, %v2566_v29 }
  0xd6   : > { %v973_v28 = vmul.f32 %v1127_v27, %v941_v59  ;;  %v991_v57 = vmul.f32 %v971_v26, %v2572_v49  ;;  %v996_v6 = vadd.f32 %v995_v5, %v989_v41  ;;  %v1007_v54 = vadd.f32 %v1006_v10, %v969_v9  ;;  %v1131_v9 = vld [vmem:[%s1330_s19 + $0x10] sm:$0xff] }
  0xd7   : > { %v965_v46 = vmul.f32 %v1127_v27, %v2107_v44  ;;  %v979_v42 = vadd.f32 %v978_v33, %v963_v60  ;;  %v1019_v14 = vadd.f32 %v1018_v7, %v2571_v32  ;;  %v974_v53 = vmul.f32 %v1128_v12, %v942_v52 }
  0xd8   : > { %v992_v4 = vmul.f32 %v972_v15, %v2573_v13  ;;  %v997_v40 = vadd.f32 %v996_v6, %v990_v56  ;;  %v1008_v21 = vadd.f32 %v1007_v54, %v970_v45  ;;  %v966_v50 = vmul.f32 %v1128_v12, %v2145_v47 }
  0xd9   : > { %v980_v23 = vadd.f32 %v979_v42, %v964_v39  ;;  %v1020_v19 = vadd.f32 %v1019_v14, %v2572_v49  ;;  %v993_v8 = vmul.f32 %v973_v28, %v2574_v36  ;;  %v994_v25 = vmul.f32 %v974_v53, %v2575_v24 }
  0xda   : > { %v998_v37 = vadd.f32 %v997_v40, %v991_v57  ;;  %v1009_v44 = vadd.f32 %v1008_v21, %v971_v26 }
  0xdb   : > { %v981_v38 = vadd.f32 %v980_v23, %v965_v46  ;;  %v1021_v17 = vadd.f32 %v1020_v19, %v2573_v13 }
  0xdc   : > { %v999_v22 = vadd.f32 %v998_v37, %v992_v4  ;;  %v1010_v59 = vadd.f32 %v1009_v44, %v972_v15 }
  0xdd   : > { %v982_v47 = vadd.f32 %v981_v38, %v966_v50  ;;  %v1022_v62 = vadd.f32 %v1021_v17, %v2574_v36 }
  0xde   : > { %v1000_v11 = vadd.f32 %v999_v22, %v993_v8  ;;  %v1011_v31 = vadd.f32 %v1010_v59, %v973_v28 }
  0xdf   : > { %v983_v55 = vadd.f32 %v982_v47, %v975_v0  ;;  %v1023_v45 = vadd.f32 %v1022_v62, %v2575_v24 }
  0xe0   : > { %v1001_v1 = vadd.f32 %v1000_v11, %v994_v25  ;;  %v1012_v30 = vadd.f32 %v1011_v31, %v974_v53 }
  0xe1   : > { %984 = vst [vmem:[%s1330_s19] sm:$0xff] %v983_v55  ;;  %v1024_v61 = vadd.f32 %v1133_v20, %v1023_v45 }
  0xe2   : > { %v1002_v2 = vadd.f32 %v1129_v16, %v1001_v1  ;;  %v1013_v51 = vadd.f32 %v1131_v9, %v1012_v30 }
  0xe3   : > { %1134 = vst [vmem:[%s1330_s19 + $0x18] sm:$0xff] %v1024_v61 }
  0xe4   : > { %1130 = vst [vmem:[%s1330_s19 + $0x8] sm:$0xff] %v1002_v2 }
  0xe5   : > { %1132 = vst [vmem:[%s1330_s19 + $0x10] sm:$0xff] %v1013_v51 }
  0xe6 PF: > { %s12_s11 = sadd.s32 1, %s1282_s11   ;;  %s2576_s9 = smov %s1278_s10 }
  0xe7   : > { %p9_p8 = scmp.ge.s32.totalorder %s12_s11, 4   ;;  %s2577_s10 = smov %s2579_s12 }
  0xe9   :  { %11 = sbr.rel (!%p9_p8) target bundleno = 2 (0x2), region = 79 }

</bundles_post_ra>
